<compile_context>
chip_gen: v7x
topology: tpu7x:2x2x1
jax: 0.10.0
libtpu: 0.0.40
codegen_flags: <defaults>
</compile_context>

<pallas_src>
import math
from functools import partial

import jax
import jax.numpy as jnp
from jax.experimental import pallas as pl
from jax.experimental.pallas import tpu as pltpu

# ---- scaled-down DistilBERT config (synthetic) ----
VOCAB     = 128
MAX_POS   = 32
DIM       = 64            # hidden size
N_HEADS   = 4
HEAD_DIM  = DIM // N_HEADS
FFN_DIM   = 128
N_LAYERS  = 2
N_CLASSES = 2
OUT_PAD   = 128           # lane-dense padded classifier width (>= 128 lanes)
LN_EPS    = 1e-12
MASK_MIN  = float(jnp.finfo(jnp.float32).min)   # masked_fill value in DistilBERT


# ----------------------------------------------------------------------------
# in-kernel helpers (pure functions on traced values)
# ----------------------------------------------------------------------------
def _gelu(x):
    # tanh-approx GELU: moves the transcendental to the EUP tanh slot.
    # Deviates from torch's exact erf-GELU by <~1e-3 (review-sanctioned).
    c = math.sqrt(2.0 / math.pi)
    return 0.5 * x * (1.0 + jnp.tanh(c * (x + 0.044715 * x * x * x)))


def _layernorm(x, g, b):
    mean = jnp.mean(x, axis=-1, keepdims=True)
    xc = x - mean
    var = jnp.mean(xc * xc, axis=-1, keepdims=True)       # biased var (torch LN)
    return xc * jax.lax.rsqrt(var + LN_EPS) * g + b


# ----------------------------------------------------------------------------
# fused encoder + classifier kernel (one grid step == one batch element)
# ----------------------------------------------------------------------------
def _encoder_kernel(ids_ref,                       # SMEM (B, S) int32 (prefetch)
                    mask_ref,                      # VMEM (1, S) additive mask
                    wemb_ref, pos_ref, eg_ref, eb_ref,
                    wqkv_ref, bqkv_ref, wo_ref, bo_ref, ln1g_ref, ln1b_ref,
                    w1_ref, b1_ref, w2_ref, b2_ref, ln2g_ref, ln2b_ref,
                    wout_ref, bout_ref,
                    out_ref,                       # VMEM (S, OUT_PAD)
                    emb_ref,                       # VMEM scratch (S, DIM)
                    *, seq_len):
    b = pl.program_id(0)

    # --- embedding: in-kernel gather of word rows + position add + LayerNorm ---
    for s in range(seq_len):                       # static loop, S dynamic row loads
        tok = ids_ref[b, s]                        # SMEM scalar read
        emb_ref[pl.ds(s, 1), :] = wemb_ref[tok]    # (VOCAB,1,D) leading-axis gather
    h = _layernorm(emb_ref[...] + pos_ref[...], eg_ref[...], eb_ref[...])  # (S, D)

    mask_add = mask_ref[...]                       # (1, S): 0 keep / MASK_MIN masked
    scale = 1.0 / math.sqrt(HEAD_DIM)

    def layer(l, h):
        # fused QKV projection: one (D, 3D) matmul + bias
        qkv = jnp.dot(h, wqkv_ref[l], preferred_element_type=jnp.float32) + bqkv_ref[l]
        heads = []
        for hd in range(N_HEADS):                  # per-head slices, no transposes
            lo = hd * HEAD_DIM
            qh = qkv[:, lo:lo + HEAD_DIM] * scale
            kh = qkv[:, DIM + lo:DIM + lo + HEAD_DIM]
            vh = qkv[:, 2 * DIM + lo:2 * DIM + lo + HEAD_DIM]
            # scores = q @ k^T via dot_general (contract last dims; no transpose)
            sc = jax.lax.dot_general(qh, kh, (((1,), (1,)), ((), ())),
                                     preferred_element_type=jnp.float32)
            sc = sc + mask_add                     # additive masked_fill semantics
            m = jnp.max(sc, axis=-1, keepdims=True)
            e = jnp.exp(sc - m)
            w = e * pl.reciprocal(jnp.sum(e, axis=-1, keepdims=True), approx=True)
            heads.append(jnp.dot(w, vh, preferred_element_type=jnp.float32))
        ctx = jnp.concatenate(heads, axis=-1)      # (S, D)
        # o-proj + bias + residual + LayerNorm (fused epilogue)
        attn = jnp.dot(ctx, wo_ref[l], preferred_element_type=jnp.float32) + bo_ref[l]
        h = _layernorm(attn + h, ln1g_ref[l], ln1b_ref[l])
        # FFN: GELU(x W1 + b1) W2 + b2 + residual + LayerNorm (fused)
        a = _gelu(jnp.dot(h, w1_ref[l], preferred_element_type=jnp.float32) + b1_ref[l])
        f = jnp.dot(a, w2_ref[l], preferred_element_type=jnp.float32) + b2_ref[l]
        return _layernorm(f + h, ln2g_ref[l], ln2b_ref[l])

    h = jax.lax.fori_loop(0, N_LAYERS, layer, h, unroll=True)

    # classifier head on a lane-dense padded (S, 128) tile; wrapper keeps
    # row 0 (CLS) and the first N_CLASSES lanes.  Dropout(p=0.3) is identity.
    out_ref[...] = (jnp.dot(h, wout_ref[...], preferred_element_type=jnp.float32)
                    + bout_ref[...])


# ----------------------------------------------------------------------------
# parameter init (deterministic, synthetic, pre-packed for the fused kernel)
# ----------------------------------------------------------------------------
def init_params(key):
    keys = jax.random.split(key, N_LAYERS + 3)

    def dense(k, i, o):
        return jax.random.normal(k, (i, o), jnp.float32) * 0.02

    word_emb = jax.random.normal(keys[0], (VOCAB, DIM), jnp.float32) * 0.02
    pos_emb  = jax.random.normal(keys[1], (MAX_POS, DIM), jnp.float32) * 0.02

    wqkv, bqkv, wo, bo, ln1g, ln1b = [], [], [], [], [], []
    w1, b1, w2, b2, ln2g, ln2b = [], [], [], [], [], []
    for l in range(N_LAYERS):
        lk = jax.random.split(keys[2 + l], 6)
        wq, wk, wv = dense(lk[0], DIM, DIM), dense(lk[1], DIM, DIM), dense(lk[2], DIM, DIM)
        wqkv.append(jnp.concatenate([wq, wk, wv], axis=1))       # (D, 3D) fused QKV
        bqkv.append(jnp.zeros((1, 3 * DIM), jnp.float32))
        wo.append(dense(lk[3], DIM, DIM));   bo.append(jnp.zeros((1, DIM), jnp.float32))
        ln1g.append(jnp.ones((1, DIM), jnp.float32)); ln1b.append(jnp.zeros((1, DIM), jnp.float32))
        w1.append(dense(lk[4], DIM, FFN_DIM)); b1.append(jnp.zeros((1, FFN_DIM), jnp.float32))
        w2.append(dense(lk[5], FFN_DIM, DIM)); b2.append(jnp.zeros((1, DIM), jnp.float32))
        ln2g.append(jnp.ones((1, DIM), jnp.float32)); ln2b.append(jnp.zeros((1, DIM), jnp.float32))

    w_out = dense(keys[2 + N_LAYERS], DIM, N_CLASSES)
    b_out = jnp.zeros((N_CLASSES,), jnp.float32)
    # zero-pad classifier to 128 lanes (lane-dense output tile)
    w_out_pad = jnp.zeros((DIM, OUT_PAD), jnp.float32).at[:, :N_CLASSES].set(w_out)
    b_out_pad = jnp.zeros((1, OUT_PAD), jnp.float32).at[:, :N_CLASSES].set(b_out)

    stack = lambda xs: jnp.stack(xs, axis=0)
    return {
        # (VOCAB, 1, D) so the in-kernel gather is a leading-axis dynamic index
        "word_emb": word_emb.reshape(VOCAB, 1, DIM),
        "pos_emb":  pos_emb,
        "emb_ln_g": jnp.ones((1, DIM), jnp.float32),
        "emb_ln_b": jnp.zeros((1, DIM), jnp.float32),
        "wqkv": stack(wqkv), "bqkv": stack(bqkv),
        "wo": stack(wo), "bo": stack(bo),
        "ln1_g": stack(ln1g), "ln1_b": stack(ln1b),
        "w1": stack(w1), "b1": stack(b1),
        "w2": stack(w2), "b2": stack(b2),
        "ln2_g": stack(ln2g), "ln2_b": stack(ln2b),
        "w_out_pad": w_out_pad, "b_out_pad": b_out_pad,
    }


# ----------------------------------------------------------------------------
# forward pass: a single fused pallas_call
# ----------------------------------------------------------------------------
@jax.jit
def xss_detector_forward(params, input_ids, attention_mask):
    B, S = input_ids.shape

    # additive mask: 0.0 where attended, finfo.min where masked   (B, 1, S)
    mask_add = ((1.0 - attention_mask.astype(jnp.float32)) * MASK_MIN).reshape(B, 1, S)
    pos = params["pos_emb"][:S]                                   # (S, D)

    L = N_LAYERS
    grid_spec = pltpu.PrefetchScalarGridSpec(
        num_scalar_prefetch=1,                    # input_ids -> SMEM
        grid=(B,),
        in_specs=[
            pl.BlockSpec((None, 1, S),        lambda b, ids: (b, 0, 0)),   # mask_add
            pl.BlockSpec((VOCAB, 1, DIM),     lambda b, ids: (0, 0, 0)),   # word_emb
            pl.BlockSpec((S, DIM),            lambda b, ids: (0, 0)),      # pos
            pl.BlockSpec((1, DIM),            lambda b, ids: (0, 0)),      # emb_ln_g
            pl.BlockSpec((1, DIM),            lambda b, ids: (0, 0)),      # emb_ln_b
            pl.BlockSpec((L, DIM, 3 * DIM),   lambda b, ids: (0, 0, 0)),   # wqkv
            pl.BlockSpec((L, 1, 3 * DIM),     lambda b, ids: (0, 0, 0)),   # bqkv
            pl.BlockSpec((L, DIM, DIM),       lambda b, ids: (0, 0, 0)),   # wo
            pl.BlockSpec((L, 1, DIM),         lambda b, ids: (0, 0, 0)),   # bo
            pl.BlockSpec((L, 1, DIM),         lambda b, ids: (0, 0, 0)),   # ln1_g
            pl.BlockSpec((L, 1, DIM),         lambda b, ids: (0, 0, 0)),   # ln1_b
            pl.BlockSpec((L, DIM, FFN_DIM),   lambda b, ids: (0, 0, 0)),   # w1
            pl.BlockSpec((L, 1, FFN_DIM),     lambda b, ids: (0, 0, 0)),   # b1
            pl.BlockSpec((L, FFN_DIM, DIM),   lambda b, ids: (0, 0, 0)),   # w2
            pl.BlockSpec((L, 1, DIM),         lambda b, ids: (0, 0, 0)),   # b2
            pl.BlockSpec((L, 1, DIM),         lambda b, ids: (0, 0, 0)),   # ln2_g
            pl.BlockSpec((L, 1, DIM),         lambda b, ids: (0, 0, 0)),   # ln2_b
            pl.BlockSpec((DIM, OUT_PAD),      lambda b, ids: (0, 0)),      # w_out_pad
            pl.BlockSpec((1, OUT_PAD),        lambda b, ids: (0, 0)),      # b_out_pad
        ],
        out_specs=pl.BlockSpec((None, S, OUT_PAD), lambda b, ids: (b, 0, 0)),
        scratch_shapes=[pltpu.VMEM((S, DIM), jnp.float32)],        # embedding buffer
    )

    out = pl.pallas_call(
        partial(_encoder_kernel, seq_len=S),
        out_shape=jax.ShapeDtypeStruct((B, S, OUT_PAD), jnp.float32),
        grid_spec=grid_spec,
        compiler_params=pltpu.CompilerParams(
            dimension_semantics=("parallel",)),    # batch across TCs (v7x megacore)
    )(input_ids.astype(jnp.int32), mask_add,
      params["word_emb"], pos, params["emb_ln_g"], params["emb_ln_b"],
      params["wqkv"], params["bqkv"], params["wo"], params["bo"],
      params["ln1_g"], params["ln1_b"],
      params["w1"], params["b1"], params["w2"], params["b2"],
      params["ln2_g"], params["ln2_b"],
      params["w_out_pad"], params["b_out_pad"])

    # CLS token logits (padded lanes discarded)
    return out[:, 0, :N_CLASSES]


if __name__ == "__main__":
    key = jax.random.PRNGKey(0)
    pkey, dkey = jax.random.split(key)
    params = init_params(pkey)

    B, S = 2, 8
    input_ids = jax.random.randint(dkey, (B, S), 0, VOCAB, dtype=jnp.int32)
    attention_mask = jnp.array(
        [[1, 1, 1, 1, 1, 1, 1, 1],
         [1, 1, 1, 1, 1, 0, 0, 0]], dtype=jnp.int32)

    logits = xss_detector_forward(params, input_ids, attention_mask)
    jax.block_until_ready(logits)
    assert logits.shape == (B, N_CLASSES) and logits.dtype == jnp.float32
    assert bool(jnp.all(jnp.isfinite(logits)))
    print("KERNEL_OK")
</pallas_src>

<mosaic_0001>
module attributes {stable_mosaic.version = 11 : i64} {
  func.func @_encoder_kernel(%arg0: i32, %arg1: memref<2x8xi32, #tpu.memory_space<smem>>, %arg2: memref<1x1x8xf32, #tpu.memory_space<vmem>>, %arg3: memref<128x1x64xf32, #tpu.memory_space<vmem>>, %arg4: memref<8x64xf32, #tpu.memory_space<vmem>>, %arg5: memref<1x64xf32, #tpu.memory_space<vmem>>, %arg6: memref<1x64xf32, #tpu.memory_space<vmem>>, %arg7: memref<2x64x192xf32, #tpu.memory_space<vmem>>, %arg8: memref<2x1x192xf32, #tpu.memory_space<vmem>>, %arg9: memref<2x64x64xf32, #tpu.memory_space<vmem>>, %arg10: memref<2x1x64xf32, #tpu.memory_space<vmem>>, %arg11: memref<2x1x64xf32, #tpu.memory_space<vmem>>, %arg12: memref<2x1x64xf32, #tpu.memory_space<vmem>>, %arg13: memref<2x64x128xf32, #tpu.memory_space<vmem>>, %arg14: memref<2x1x128xf32, #tpu.memory_space<vmem>>, %arg15: memref<2x128x64xf32, #tpu.memory_space<vmem>>, %arg16: memref<2x1x64xf32, #tpu.memory_space<vmem>>, %arg17: memref<2x1x64xf32, #tpu.memory_space<vmem>>, %arg18: memref<2x1x64xf32, #tpu.memory_space<vmem>>, %arg19: memref<64x128xf32, #tpu.memory_space<vmem>>, %arg20: memref<1x128xf32, #tpu.memory_space<vmem>>, %arg21: memref<1x8x128xf32, #tpu.memory_space<vmem>>, %arg22: memref<8x64xf32, #tpu.memory_space<vmem>>) attributes {dimension_semantics = [#tpu.dimension_semantics<parallel>], iteration_bounds = array<i64: 2>, scalar_prefetch = 1 : i64, scratch_operands = 1 : i64, tpu.core_type = #tpu.core_type<tc>, window_params = [{transform_indices = @transform_0, window_bounds = array<i64: 1, 1, 8>}, {pipeline_mode = #tpu.pipeline_mode<synchronous>, transform_indices = @transform_1, window_bounds = array<i64: 128, 1, 64>}, {pipeline_mode = #tpu.pipeline_mode<synchronous>, transform_indices = @transform_2, window_bounds = array<i64: 8, 64>}, {pipeline_mode = #tpu.pipeline_mode<synchronous>, transform_indices = @transform_3, window_bounds = array<i64: 1, 64>}, {pipeline_mode = #tpu.pipeline_mode<synchronous>, transform_indices = @transform_4, window_bounds = array<i64: 1, 64>}, {pipeline_mode = #tpu.pipeline_mode<synchronous>, transform_indices = @transform_5, window_bounds = array<i64: 2, 64, 192>}, {pipeline_mode = #tpu.pipeline_mode<synchronous>, transform_indices = @transform_6, window_bounds = array<i64: 2, 1, 192>}, {pipeline_mode = #tpu.pipeline_mode<synchronous>, transform_indices = @transform_7, window_bounds = array<i64: 2, 64, 64>}, {pipeline_mode = #tpu.pipeline_mode<synchronous>, transform_indices = @transform_8, window_bounds = array<i64: 2, 1, 64>}, {pipeline_mode = #tpu.pipeline_mode<synchronous>, transform_indices = @transform_9, window_bounds = array<i64: 2, 1, 64>}, {pipeline_mode = #tpu.pipeline_mode<synchronous>, transform_indices = @transform_10, window_bounds = array<i64: 2, 1, 64>}, {pipeline_mode = #tpu.pipeline_mode<synchronous>, transform_indices = @transform_11, window_bounds = array<i64: 2, 64, 128>}, {pipeline_mode = #tpu.pipeline_mode<synchronous>, transform_indices = @transform_12, window_bounds = array<i64: 2, 1, 128>}, {pipeline_mode = #tpu.pipeline_mode<synchronous>, transform_indices = @transform_13, window_bounds = array<i64: 2, 128, 64>}, {pipeline_mode = #tpu.pipeline_mode<synchronous>, transform_indices = @transform_14, window_bounds = array<i64: 2, 1, 64>}, {pipeline_mode = #tpu.pipeline_mode<synchronous>, transform_indices = @transform_15, window_bounds = array<i64: 2, 1, 64>}, {pipeline_mode = #tpu.pipeline_mode<synchronous>, transform_indices = @transform_16, window_bounds = array<i64: 2, 1, 64>}, {pipeline_mode = #tpu.pipeline_mode<synchronous>, transform_indices = @transform_17, window_bounds = array<i64: 64, 128>}, {pipeline_mode = #tpu.pipeline_mode<synchronous>, transform_indices = @transform_18, window_bounds = array<i64: 1, 128>}, {transform_indices = @transform_19, window_bounds = array<i64: 1, 8, 128>}]} {
    %0 = arith.index_cast %arg0 : i32 to index
    %c0 = arith.constant 0 : index
    %1 = memref.load %arg1[%0, %c0] : memref<2x8xi32, #tpu.memory_space<smem>>
    %2 = arith.index_cast %1 : i32 to index
    %c0_0 = arith.constant 0 : index
    %c0_1 = arith.constant 0 : index
    %3 = vector.load %arg3[%2, %c0_0, %c0_1] : memref<128x1x64xf32, #tpu.memory_space<vmem>>, vector<1x1x64xf32>
    %4 = vector.shape_cast %3 : vector<1x1x64xf32> to vector<1x64xf32>
    %c0_2 = arith.constant 0 : index
    %c0_3 = arith.constant 0 : index
    %5 = vector.load %arg22[%c0_2, %c0_3] : memref<8x64xf32, #tpu.memory_space<vmem>>, vector<1x64xf32>
    tpu.vector_store %arg22[%c0_2, %c0_3], %4 {strides = array<i32>} : memref<8x64xf32, #tpu.memory_space<vmem>>, vector<1x64xf32>,
    %6 = arith.index_cast %arg0 : i32 to index
    %c1 = arith.constant 1 : index
    %7 = memref.load %arg1[%6, %c1] : memref<2x8xi32, #tpu.memory_space<smem>>
    %8 = arith.index_cast %7 : i32 to index
    %c0_4 = arith.constant 0 : index
    %c0_5 = arith.constant 0 : index
    %9 = vector.load %arg3[%8, %c0_4, %c0_5] : memref<128x1x64xf32, #tpu.memory_space<vmem>>, vector<1x1x64xf32>
    %10 = vector.shape_cast %9 : vector<1x1x64xf32> to vector<1x64xf32>
    %c1_6 = arith.constant 1 : index
    %c0_7 = arith.constant 0 : index
    %11 = vector.load %arg22[%c1_6, %c0_7] : memref<8x64xf32, #tpu.memory_space<vmem>>, vector<1x64xf32>
    tpu.vector_store %arg22[%c1_6, %c0_7], %10 {strides = array<i32>} : memref<8x64xf32, #tpu.memory_space<vmem>>, vector<1x64xf32>,
    %12 = arith.index_cast %arg0 : i32 to index
    %c2 = arith.constant 2 : index
    %13 = memref.load %arg1[%12, %c2] : memref<2x8xi32, #tpu.memory_space<smem>>
    %14 = arith.index_cast %13 : i32 to index
    %c0_8 = arith.constant 0 : index
    %c0_9 = arith.constant 0 : index
    %15 = vector.load %arg3[%14, %c0_8, %c0_9] : memref<128x1x64xf32, #tpu.memory_space<vmem>>, vector<1x1x64xf32>
    %16 = vector.shape_cast %15 : vector<1x1x64xf32> to vector<1x64xf32>
    %c2_10 = arith.constant 2 : index
    %c0_11 = arith.constant 0 : index
    %17 = vector.load %arg22[%c2_10, %c0_11] : memref<8x64xf32, #tpu.memory_space<vmem>>, vector<1x64xf32>
    tpu.vector_store %arg22[%c2_10, %c0_11], %16 {strides = array<i32>} : memref<8x64xf32, #tpu.memory_space<vmem>>, vector<1x64xf32>,
    %18 = arith.index_cast %arg0 : i32 to index
    %c3 = arith.constant 3 : index
    %19 = memref.load %arg1[%18, %c3] : memref<2x8xi32, #tpu.memory_space<smem>>
    %20 = arith.index_cast %19 : i32 to index
    %c0_12 = arith.constant 0 : index
    %c0_13 = arith.constant 0 : index
    %21 = vector.load %arg3[%20, %c0_12, %c0_13] : memref<128x1x64xf32, #tpu.memory_space<vmem>>, vector<1x1x64xf32>
    %22 = vector.shape_cast %21 : vector<1x1x64xf32> to vector<1x64xf32>
    %c3_14 = arith.constant 3 : index
    %c0_15 = arith.constant 0 : index
    %23 = vector.load %arg22[%c3_14, %c0_15] : memref<8x64xf32, #tpu.memory_space<vmem>>, vector<1x64xf32>
    tpu.vector_store %arg22[%c3_14, %c0_15], %22 {strides = array<i32>} : memref<8x64xf32, #tpu.memory_space<vmem>>, vector<1x64xf32>,
    %24 = arith.index_cast %arg0 : i32 to index
    %c4 = arith.constant 4 : index
    %25 = memref.load %arg1[%24, %c4] : memref<2x8xi32, #tpu.memory_space<smem>>
    %26 = arith.index_cast %25 : i32 to index
    %c0_16 = arith.constant 0 : index
    %c0_17 = arith.constant 0 : index
    %27 = vector.load %arg3[%26, %c0_16, %c0_17] : memref<128x1x64xf32, #tpu.memory_space<vmem>>, vector<1x1x64xf32>
    %28 = vector.shape_cast %27 : vector<1x1x64xf32> to vector<1x64xf32>
    %c4_18 = arith.constant 4 : index
    %c0_19 = arith.constant 0 : index
    %29 = vector.load %arg22[%c4_18, %c0_19] : memref<8x64xf32, #tpu.memory_space<vmem>>, vector<1x64xf32>
    tpu.vector_store %arg22[%c4_18, %c0_19], %28 {strides = array<i32>} : memref<8x64xf32, #tpu.memory_space<vmem>>, vector<1x64xf32>,
    %30 = arith.index_cast %arg0 : i32 to index
    %c5 = arith.constant 5 : index
    %31 = memref.load %arg1[%30, %c5] : memref<2x8xi32, #tpu.memory_space<smem>>
    %32 = arith.index_cast %31 : i32 to index
    %c0_20 = arith.constant 0 : index
    %c0_21 = arith.constant 0 : index
    %33 = vector.load %arg3[%32, %c0_20, %c0_21] : memref<128x1x64xf32, #tpu.memory_space<vmem>>, vector<1x1x64xf32>
    %34 = vector.shape_cast %33 : vector<1x1x64xf32> to vector<1x64xf32>
    %c5_22 = arith.constant 5 : index
    %c0_23 = arith.constant 0 : index
    %35 = vector.load %arg22[%c5_22, %c0_23] : memref<8x64xf32, #tpu.memory_space<vmem>>, vector<1x64xf32>
    tpu.vector_store %arg22[%c5_22, %c0_23], %34 {strides = array<i32>} : memref<8x64xf32, #tpu.memory_space<vmem>>, vector<1x64xf32>,
    %36 = arith.index_cast %arg0 : i32 to index
    %c6 = arith.constant 6 : index
    %37 = memref.load %arg1[%36, %c6] : memref<2x8xi32, #tpu.memory_space<smem>>
    %38 = arith.index_cast %37 : i32 to index
    %c0_24 = arith.constant 0 : index
    %c0_25 = arith.constant 0 : index
    %39 = vector.load %arg3[%38, %c0_24, %c0_25] : memref<128x1x64xf32, #tpu.memory_space<vmem>>, vector<1x1x64xf32>
    %40 = vector.shape_cast %39 : vector<1x1x64xf32> to vector<1x64xf32>
    %c6_26 = arith.constant 6 : index
    %c0_27 = arith.constant 0 : index
    %41 = vector.load %arg22[%c6_26, %c0_27] : memref<8x64xf32, #tpu.memory_space<vmem>>, vector<1x64xf32>
    tpu.vector_store %arg22[%c6_26, %c0_27], %40 {strides = array<i32>} : memref<8x64xf32, #tpu.memory_space<vmem>>, vector<1x64xf32>,
    %42 = arith.index_cast %arg0 : i32 to index
    %c7 = arith.constant 7 : index
    %43 = memref.load %arg1[%42, %c7] : memref<2x8xi32, #tpu.memory_space<smem>>
    %44 = arith.index_cast %43 : i32 to index
    %c0_28 = arith.constant 0 : index
    %c0_29 = arith.constant 0 : index
    %45 = vector.load %arg3[%44, %c0_28, %c0_29] : memref<128x1x64xf32, #tpu.memory_space<vmem>>, vector<1x1x64xf32>
    %46 = vector.shape_cast %45 : vector<1x1x64xf32> to vector<1x64xf32>
    %c7_30 = arith.constant 7 : index
    %c0_31 = arith.constant 0 : index
    %47 = vector.load %arg22[%c7_30, %c0_31] : memref<8x64xf32, #tpu.memory_space<vmem>>, vector<1x64xf32>
    tpu.vector_store %arg22[%c7_30, %c0_31], %46 {strides = array<i32>} : memref<8x64xf32, #tpu.memory_space<vmem>>, vector<1x64xf32>,
    %c0_32 = arith.constant 0 : index
    %c0_33 = arith.constant 0 : index
    %48 = vector.load %arg22[%c0_32, %c0_33] : memref<8x64xf32, #tpu.memory_space<vmem>>, vector<8x64xf32>
    %c0_34 = arith.constant 0 : index
    %c0_35 = arith.constant 0 : index
    %49 = vector.load %arg4[%c0_34, %c0_35] : memref<8x64xf32, #tpu.memory_space<vmem>>, vector<8x64xf32>
    %50 = arith.addf %48, %49 : vector<8x64xf32>
    %c0_36 = arith.constant 0 : index
    %c0_37 = arith.constant 0 : index
    %51 = vector.load %arg5[%c0_36, %c0_37] : memref<1x64xf32, #tpu.memory_space<vmem>>, vector<1x64xf32>
    %c0_38 = arith.constant 0 : index
    %c0_39 = arith.constant 0 : index
    %52 = vector.load %arg6[%c0_38, %c0_39] : memref<1x64xf32, #tpu.memory_space<vmem>>, vector<1x64xf32>
    %cst = arith.constant dense<0.000000e+00> : vector<8xf32>
    %53 = vector.multi_reduction <add>, %50, %cst [1] : vector<8x64xf32> to vector<8xf32>
    %54 = vector.shape_cast %53 : vector<8xf32> to vector<8x1xf32>
    %cst_40 = arith.constant 6.400000e+01 : f32
    %55 = vector.broadcast %cst_40 : f32 to vector<8x1xf32>
    %56 = arith.divf %54, %55 : vector<8x1xf32>
    %57 = vector.broadcast %56 : vector<8x1xf32> to vector<8x64xf32>
    %58 = arith.subf %50, %57 : vector<8x64xf32>
    %59 = arith.mulf %58, %58 : vector<8x64xf32>
    %cst_41 = arith.constant dense<0.000000e+00> : vector<8xf32>
    %60 = vector.multi_reduction <add>, %59, %cst_41 [1] : vector<8x64xf32> to vector<8xf32>
    %61 = vector.shape_cast %60 : vector<8xf32> to vector<8x1xf32>
    %cst_42 = arith.constant 6.400000e+01 : f32
    %62 = vector.broadcast %cst_42 : f32 to vector<8x1xf32>
    %63 = arith.divf %61, %62 : vector<8x1xf32>
    %cst_43 = arith.constant 9.99999996E-13 : f32
    %64 = vector.broadcast %cst_43 : f32 to vector<8x1xf32>
    %65 = arith.addf %63, %64 : vector<8x1xf32>
    %66 = math.rsqrt %65 : vector<8x1xf32>
    %67 = vector.broadcast %66 : vector<8x1xf32> to vector<8x64xf32>
    %68 = arith.mulf %58, %67 : vector<8x64xf32>
    %69 = vector.broadcast %51 : vector<1x64xf32> to vector<8x64xf32>
    %70 = arith.mulf %68, %69 : vector<8x64xf32>
    %71 = vector.broadcast %52 : vector<1x64xf32> to vector<8x64xf32>
    %72 = arith.addf %70, %71 : vector<8x64xf32>
    %c0_44 = arith.constant 0 : index
    %c0_45 = arith.constant 0 : index
    %c0_46 = arith.constant 0 : index
    %73 = vector.load %arg2[%c0_44, %c0_45, %c0_46] : memref<1x1x8xf32, #tpu.memory_space<vmem>>, vector<1x1x8xf32>
    %74 = vector.shape_cast %73 : vector<1x1x8xf32> to vector<1x8xf32>
    %c0_i32 = arith.constant 0 : i32
    %75 = arith.index_cast %c0_i32 : i32 to index
    %c0_47 = arith.constant 0 : index
    %c0_48 = arith.constant 0 : index
    %76 = vector.load %arg7[%75, %c0_47, %c0_48] : memref<2x64x192xf32, #tpu.memory_space<vmem>>, vector<1x64x192xf32>
    %77 = vector.shape_cast %76 : vector<1x64x192xf32> to vector<64x192xf32>
    %cst_49 = arith.constant dense<0.000000e+00> : vector<8x192xf32>
    %78 = tpu.matmul %72, %77, %cst_49 {dimension_numbers = #tpu.dot_dimension_numbers<[1], [0], [0], [1], [0, 0, 1, 1], [], []>} : vector<8x64xf32>, vector<64x192xf32>, vector<8x192xf32> -> vector<8x192xf32>
    %79 = arith.index_cast %c0_i32 : i32 to index
    %c0_50 = arith.constant 0 : index
    %c0_51 = arith.constant 0 : index
    %80 = vector.load %arg8[%79, %c0_50, %c0_51] : memref<2x1x192xf32, #tpu.memory_space<vmem>>, vector<1x1x192xf32>
    %81 = vector.shape_cast %80 : vector<1x1x192xf32> to vector<1x192xf32>
    %82 = vector.broadcast %81 : vector<1x192xf32> to vector<8x192xf32>
    %83 = arith.addf %78, %82 : vector<8x192xf32>
    %84 = vector.extract_strided_slice %83 {offsets = [0, 0], sizes = [8, 16], strides = [1, 1]} : vector<8x192xf32> to vector<8x16xf32>
    %cst_52 = arith.constant 2.500000e-01 : f32
    %85 = vector.broadcast %cst_52 : f32 to vector<8x16xf32>
    %86 = arith.mulf %84, %85 : vector<8x16xf32>
    %87 = vector.extract_strided_slice %83 {offsets = [0, 64], sizes = [8, 16], strides = [1, 1]} : vector<8x192xf32> to vector<8x16xf32>
    %88 = vector.extract_strided_slice %83 {offsets = [0, 128], sizes = [8, 16], strides = [1, 1]} : vector<8x192xf32> to vector<8x16xf32>
    %cst_53 = arith.constant dense<0.000000e+00> : vector<8x8xf32>
    %89 = tpu.matmul %86, %87, %cst_53 {dimension_numbers = #tpu.dot_dimension_numbers<[1], [1], [0], [0], [0, 0, 1, 0], [], []>} : vector<8x16xf32>, vector<8x16xf32>, vector<8x8xf32> -> vector<8x8xf32>
    %90 = vector.broadcast %74 : vector<1x8xf32> to vector<8x8xf32>
    %91 = arith.addf %89, %90 : vector<8x8xf32>
    %cst_54 = arith.constant dense<0xFF800000> : vector<8xf32>
    %92 = vector.multi_reduction <maximumf>, %91, %cst_54 [1] : vector<8x8xf32> to vector<8xf32>
    %93 = vector.shape_cast %92 : vector<8xf32> to vector<8x1xf32>
    %94 = vector.broadcast %93 : vector<8x1xf32> to vector<8x8xf32>
    %95 = arith.subf %91, %94 : vector<8x8xf32>
    %96 = math.exp %95 : vector<8x8xf32>
    %cst_55 = arith.constant dense<0.000000e+00> : vector<8xf32>
    %97 = vector.multi_reduction <add>, %96, %cst_55 [1] : vector<8x8xf32> to vector<8xf32>
    %98 = vector.shape_cast %97 : vector<8xf32> to vector<8x1xf32>
    %99 = tpu.reciprocal %98 {approx = true} : vector<8x1xf32> -> vector<8x1xf32>
    %100 = vector.broadcast %99 : vector<8x1xf32> to vector<8x8xf32>
    %101 = arith.mulf %96, %100 : vector<8x8xf32>
    %cst_56 = arith.constant dense<0.000000e+00> : vector<8x16xf32>
    %102 = tpu.matmul %101, %88, %cst_56 {dimension_numbers = #tpu.dot_dimension_numbers<[1], [0], [0], [1], [0, 0, 1, 1], [], []>} : vector<8x8xf32>, vector<8x16xf32>, vector<8x16xf32> -> vector<8x16xf32>
    %103 = vector.extract_strided_slice %83 {offsets = [0, 16], sizes = [8, 16], strides = [1, 1]} : vector<8x192xf32> to vector<8x16xf32>
    %cst_57 = arith.constant 2.500000e-01 : f32
    %104 = vector.broadcast %cst_57 : f32 to vector<8x16xf32>
    %105 = arith.mulf %103, %104 : vector<8x16xf32>
    %106 = vector.extract_strided_slice %83 {offsets = [0, 80], sizes = [8, 16], strides = [1, 1]} : vector<8x192xf32> to vector<8x16xf32>
    %107 = vector.extract_strided_slice %83 {offsets = [0, 144], sizes = [8, 16], strides = [1, 1]} : vector<8x192xf32> to vector<8x16xf32>
    %cst_58 = arith.constant dense<0.000000e+00> : vector<8x8xf32>
    %108 = tpu.matmul %105, %106, %cst_58 {dimension_numbers = #tpu.dot_dimension_numbers<[1], [1], [0], [0], [0, 0, 1, 0], [], []>} : vector<8x16xf32>, vector<8x16xf32>, vector<8x8xf32> -> vector<8x8xf32>
    %109 = vector.broadcast %74 : vector<1x8xf32> to vector<8x8xf32>
    %110 = arith.addf %108, %109 : vector<8x8xf32>
    %cst_59 = arith.constant dense<0xFF800000> : vector<8xf32>
    %111 = vector.multi_reduction <maximumf>, %110, %cst_59 [1] : vector<8x8xf32> to vector<8xf32>
    %112 = vector.shape_cast %111 : vector<8xf32> to vector<8x1xf32>
    %113 = vector.broadcast %112 : vector<8x1xf32> to vector<8x8xf32>
    %114 = arith.subf %110, %113 : vector<8x8xf32>
    %115 = math.exp %114 : vector<8x8xf32>
    %cst_60 = arith.constant dense<0.000000e+00> : vector<8xf32>
    %116 = vector.multi_reduction <add>, %115, %cst_60 [1] : vector<8x8xf32> to vector<8xf32>
    %117 = vector.shape_cast %116 : vector<8xf32> to vector<8x1xf32>
    %118 = tpu.reciprocal %117 {approx = true} : vector<8x1xf32> -> vector<8x1xf32>
    %119 = vector.broadcast %118 : vector<8x1xf32> to vector<8x8xf32>
    %120 = arith.mulf %115, %119 : vector<8x8xf32>
    %cst_61 = arith.constant dense<0.000000e+00> : vector<8x16xf32>
    %121 = tpu.matmul %120, %107, %cst_61 {dimension_numbers = #tpu.dot_dimension_numbers<[1], [0], [0], [1], [0, 0, 1, 1], [], []>} : vector<8x8xf32>, vector<8x16xf32>, vector<8x16xf32> -> vector<8x16xf32>
    %122 = vector.extract_strided_slice %83 {offsets = [0, 32], sizes = [8, 16], strides = [1, 1]} : vector<8x192xf32> to vector<8x16xf32>
    %cst_62 = arith.constant 2.500000e-01 : f32
    %123 = vector.broadcast %cst_62 : f32 to vector<8x16xf32>
    %124 = arith.mulf %122, %123 : vector<8x16xf32>
    %125 = vector.extract_strided_slice %83 {offsets = [0, 96], sizes = [8, 16], strides = [1, 1]} : vector<8x192xf32> to vector<8x16xf32>
    %126 = vector.extract_strided_slice %83 {offsets = [0, 160], sizes = [8, 16], strides = [1, 1]} : vector<8x192xf32> to vector<8x16xf32>
    %cst_63 = arith.constant dense<0.000000e+00> : vector<8x8xf32>
    %127 = tpu.matmul %124, %125, %cst_63 {dimension_numbers = #tpu.dot_dimension_numbers<[1], [1], [0], [0], [0, 0, 1, 0], [], []>} : vector<8x16xf32>, vector<8x16xf32>, vector<8x8xf32> -> vector<8x8xf32>
    %128 = vector.broadcast %74 : vector<1x8xf32> to vector<8x8xf32>
    %129 = arith.addf %127, %128 : vector<8x8xf32>
    %cst_64 = arith.constant dense<0xFF800000> : vector<8xf32>
    %130 = vector.multi_reduction <maximumf>, %129, %cst_64 [1] : vector<8x8xf32> to vector<8xf32>
    %131 = vector.shape_cast %130 : vector<8xf32> to vector<8x1xf32>
    %132 = vector.broadcast %131 : vector<8x1xf32> to vector<8x8xf32>
    %133 = arith.subf %129, %132 : vector<8x8xf32>
    %134 = math.exp %133 : vector<8x8xf32>
    %cst_65 = arith.constant dense<0.000000e+00> : vector<8xf32>
    %135 = vector.multi_reduction <add>, %134, %cst_65 [1] : vector<8x8xf32> to vector<8xf32>
    %136 = vector.shape_cast %135 : vector<8xf32> to vector<8x1xf32>
    %137 = tpu.reciprocal %136 {approx = true} : vector<8x1xf32> -> vector<8x1xf32>
    %138 = vector.broadcast %137 : vector<8x1xf32> to vector<8x8xf32>
    %139 = arith.mulf %134, %138 : vector<8x8xf32>
    %cst_66 = arith.constant dense<0.000000e+00> : vector<8x16xf32>
    %140 = tpu.matmul %139, %126, %cst_66 {dimension_numbers = #tpu.dot_dimension_numbers<[1], [0], [0], [1], [0, 0, 1, 1], [], []>} : vector<8x8xf32>, vector<8x16xf32>, vector<8x16xf32> -> vector<8x16xf32>
    %141 = vector.extract_strided_slice %83 {offsets = [0, 48], sizes = [8, 16], strides = [1, 1]} : vector<8x192xf32> to vector<8x16xf32>
    %cst_67 = arith.constant 2.500000e-01 : f32
    %142 = vector.broadcast %cst_67 : f32 to vector<8x16xf32>
    %143 = arith.mulf %141, %142 : vector<8x16xf32>
    %144 = vector.extract_strided_slice %83 {offsets = [0, 112], sizes = [8, 16], strides = [1, 1]} : vector<8x192xf32> to vector<8x16xf32>
    %145 = vector.extract_strided_slice %83 {offsets = [0, 176], sizes = [8, 16], strides = [1, 1]} : vector<8x192xf32> to vector<8x16xf32>
    %cst_68 = arith.constant dense<0.000000e+00> : vector<8x8xf32>
    %146 = tpu.matmul %143, %144, %cst_68 {dimension_numbers = #tpu.dot_dimension_numbers<[1], [1], [0], [0], [0, 0, 1, 0], [], []>} : vector<8x16xf32>, vector<8x16xf32>, vector<8x8xf32> -> vector<8x8xf32>
    %147 = vector.broadcast %74 : vector<1x8xf32> to vector<8x8xf32>
    %148 = arith.addf %146, %147 : vector<8x8xf32>
    %cst_69 = arith.constant dense<0xFF800000> : vector<8xf32>
    %149 = vector.multi_reduction <maximumf>, %148, %cst_69 [1] : vector<8x8xf32> to vector<8xf32>
    %150 = vector.shape_cast %149 : vector<8xf32> to vector<8x1xf32>
    %151 = vector.broadcast %150 : vector<8x1xf32> to vector<8x8xf32>
    %152 = arith.subf %148, %151 : vector<8x8xf32>
    %153 = math.exp %152 : vector<8x8xf32>
    %cst_70 = arith.constant dense<0.000000e+00> : vector<8xf32>
    %154 = vector.multi_reduction <add>, %153, %cst_70 [1] : vector<8x8xf32> to vector<8xf32>
    %155 = vector.shape_cast %154 : vector<8xf32> to vector<8x1xf32>
    %156 = tpu.reciprocal %155 {approx = true} : vector<8x1xf32> -> vector<8x1xf32>
    %157 = vector.broadcast %156 : vector<8x1xf32> to vector<8x8xf32>
    %158 = arith.mulf %153, %157 : vector<8x8xf32>
    %cst_71 = arith.constant dense<0.000000e+00> : vector<8x16xf32>
    %159 = tpu.matmul %158, %145, %cst_71 {dimension_numbers = #tpu.dot_dimension_numbers<[1], [0], [0], [1], [0, 0, 1, 1], [], []>} : vector<8x8xf32>, vector<8x16xf32>, vector<8x16xf32> -> vector<8x16xf32>
    %160 = tpu.concatenate %102, %121, %140, %159 in 1 : vector<8x16xf32>, vector<8x16xf32>, vector<8x16xf32>, vector<8x16xf32> -> vector<8x64xf32>
    %161 = arith.index_cast %c0_i32 : i32 to index
    %c0_72 = arith.constant 0 : index
    %c0_73 = arith.constant 0 : index
    %162 = vector.load %arg9[%161, %c0_72, %c0_73] : memref<2x64x64xf32, #tpu.memory_space<vmem>>, vector<1x64x64xf32>
    %163 = vector.shape_cast %162 : vector<1x64x64xf32> to vector<64x64xf32>
    %cst_74 = arith.constant dense<0.000000e+00> : vector<8x64xf32>
    %164 = tpu.matmul %160, %163, %cst_74 {dimension_numbers = #tpu.dot_dimension_numbers<[1], [0], [0], [1], [0, 0, 1, 1], [], []>} : vector<8x64xf32>, vector<64x64xf32>, vector<8x64xf32> -> vector<8x64xf32>
    %165 = arith.index_cast %c0_i32 : i32 to index
    %c0_75 = arith.constant 0 : index
    %c0_76 = arith.constant 0 : index
    %166 = vector.load %arg10[%165, %c0_75, %c0_76] : memref<2x1x64xf32, #tpu.memory_space<vmem>>, vector<1x1x64xf32>
    %167 = vector.shape_cast %166 : vector<1x1x64xf32> to vector<1x64xf32>
    %168 = vector.broadcast %167 : vector<1x64xf32> to vector<8x64xf32>
    %169 = arith.addf %164, %168 : vector<8x64xf32>
    %170 = arith.addf %169, %72 : vector<8x64xf32>
    %171 = arith.index_cast %c0_i32 : i32 to index
    %c0_77 = arith.constant 0 : index
    %c0_78 = arith.constant 0 : index
    %172 = vector.load %arg11[%171, %c0_77, %c0_78] : memref<2x1x64xf32, #tpu.memory_space<vmem>>, vector<1x1x64xf32>
    %173 = vector.shape_cast %172 : vector<1x1x64xf32> to vector<1x64xf32>
    %174 = arith.index_cast %c0_i32 : i32 to index
    %c0_79 = arith.constant 0 : index
    %c0_80 = arith.constant 0 : index
    %175 = vector.load %arg12[%174, %c0_79, %c0_80] : memref<2x1x64xf32, #tpu.memory_space<vmem>>, vector<1x1x64xf32>
    %176 = vector.shape_cast %175 : vector<1x1x64xf32> to vector<1x64xf32>
    %cst_81 = arith.constant dense<0.000000e+00> : vector<8xf32>
    %177 = vector.multi_reduction <add>, %170, %cst_81 [1] : vector<8x64xf32> to vector<8xf32>
    %178 = vector.shape_cast %177 : vector<8xf32> to vector<8x1xf32>
    %cst_82 = arith.constant 6.400000e+01 : f32
    %179 = vector.broadcast %cst_82 : f32 to vector<8x1xf32>
    %180 = arith.divf %178, %179 : vector<8x1xf32>
    %181 = vector.broadcast %180 : vector<8x1xf32> to vector<8x64xf32>
    %182 = arith.subf %170, %181 : vector<8x64xf32>
    %183 = arith.mulf %182, %182 : vector<8x64xf32>
    %cst_83 = arith.constant dense<0.000000e+00> : vector<8xf32>
    %184 = vector.multi_reduction <add>, %183, %cst_83 [1] : vector<8x64xf32> to vector<8xf32>
    %185 = vector.shape_cast %184 : vector<8xf32> to vector<8x1xf32>
    %cst_84 = arith.constant 6.400000e+01 : f32
    %186 = vector.broadcast %cst_84 : f32 to vector<8x1xf32>
    %187 = arith.divf %185, %186 : vector<8x1xf32>
    %cst_85 = arith.constant 9.99999996E-13 : f32
    %188 = vector.broadcast %cst_85 : f32 to vector<8x1xf32>
    %189 = arith.addf %187, %188 : vector<8x1xf32>
    %190 = math.rsqrt %189 : vector<8x1xf32>
    %191 = vector.broadcast %190 : vector<8x1xf32> to vector<8x64xf32>
    %192 = arith.mulf %182, %191 : vector<8x64xf32>
    %193 = vector.broadcast %173 : vector<1x64xf32> to vector<8x64xf32>
    %194 = arith.mulf %192, %193 : vector<8x64xf32>
    %195 = vector.broadcast %176 : vector<1x64xf32> to vector<8x64xf32>
    %196 = arith.addf %194, %195 : vector<8x64xf32>
    %197 = arith.index_cast %c0_i32 : i32 to index
    %c0_86 = arith.constant 0 : index
    %c0_87 = arith.constant 0 : index
    %198 = vector.load %arg13[%197, %c0_86, %c0_87] : memref<2x64x128xf32, #tpu.memory_space<vmem>>, vector<1x64x128xf32>
    %199 = vector.shape_cast %198 : vector<1x64x128xf32> to vector<64x128xf32>
    %cst_88 = arith.constant dense<0.000000e+00> : vector<8x128xf32>
    %200 = tpu.matmul %196, %199, %cst_88 {dimension_numbers = #tpu.dot_dimension_numbers<[1], [0], [0], [1], [0, 0, 1, 1], [], []>} : vector<8x64xf32>, vector<64x128xf32>, vector<8x128xf32> -> vector<8x128xf32>
    %201 = arith.index_cast %c0_i32 : i32 to index
    %c0_89 = arith.constant 0 : index
    %c0_90 = arith.constant 0 : index
    %202 = vector.load %arg14[%201, %c0_89, %c0_90] : memref<2x1x128xf32, #tpu.memory_space<vmem>>, vector<1x1x128xf32>
    %203 = vector.shape_cast %202 : vector<1x1x128xf32> to vector<1x128xf32>
    %204 = vector.broadcast %203 : vector<1x128xf32> to vector<8x128xf32>
    %205 = arith.addf %200, %204 : vector<8x128xf32>
    %cst_91 = arith.constant 5.000000e-01 : f32
    %206 = vector.broadcast %cst_91 : f32 to vector<8x128xf32>
    %207 = arith.mulf %206, %205 : vector<8x128xf32>
    %cst_92 = arith.constant 4.471500e-02 : f32
    %208 = vector.broadcast %cst_92 : f32 to vector<8x128xf32>
    %209 = arith.mulf %208, %205 : vector<8x128xf32>
    %210 = arith.mulf %209, %205 : vector<8x128xf32>
    %211 = arith.mulf %210, %205 : vector<8x128xf32>
    %212 = arith.addf %205, %211 : vector<8x128xf32>
    %cst_93 = arith.constant 0.797884583 : f32
    %213 = vector.broadcast %cst_93 : f32 to vector<8x128xf32>
    %214 = arith.mulf %213, %212 : vector<8x128xf32>
    %215 = math.tanh %214 : vector<8x128xf32>
    %cst_94 = arith.constant 1.000000e+00 : f32
    %216 = vector.broadcast %cst_94 : f32 to vector<8x128xf32>
    %217 = arith.addf %216, %215 : vector<8x128xf32>
    %218 = arith.mulf %207, %217 : vector<8x128xf32>
    %219 = arith.index_cast %c0_i32 : i32 to index
    %c0_95 = arith.constant 0 : index
    %c0_96 = arith.constant 0 : index
    %220 = vector.load %arg15[%219, %c0_95, %c0_96] : memref<2x128x64xf32, #tpu.memory_space<vmem>>, vector<1x128x64xf32>
    %221 = vector.shape_cast %220 : vector<1x128x64xf32> to vector<128x64xf32>
    %cst_97 = arith.constant dense<0.000000e+00> : vector<8x64xf32>
    %222 = tpu.matmul %218, %221, %cst_97 {dimension_numbers = #tpu.dot_dimension_numbers<[1], [0], [0], [1], [0, 0, 1, 1], [], []>} : vector<8x128xf32>, vector<128x64xf32>, vector<8x64xf32> -> vector<8x64xf32>
    %223 = arith.index_cast %c0_i32 : i32 to index
    %c0_98 = arith.constant 0 : index
    %c0_99 = arith.constant 0 : index
    %224 = vector.load %arg16[%223, %c0_98, %c0_99] : memref<2x1x64xf32, #tpu.memory_space<vmem>>, vector<1x1x64xf32>
    %225 = vector.shape_cast %224 : vector<1x1x64xf32> to vector<1x64xf32>
    %226 = vector.broadcast %225 : vector<1x64xf32> to vector<8x64xf32>
    %227 = arith.addf %222, %226 : vector<8x64xf32>
    %228 = arith.addf %227, %196 : vector<8x64xf32>
    %229 = arith.index_cast %c0_i32 : i32 to index
    %c0_100 = arith.constant 0 : index
    %c0_101 = arith.constant 0 : index
    %230 = vector.load %arg17[%229, %c0_100, %c0_101] : memref<2x1x64xf32, #tpu.memory_space<vmem>>, vector<1x1x64xf32>
    %231 = vector.shape_cast %230 : vector<1x1x64xf32> to vector<1x64xf32>
    %232 = arith.index_cast %c0_i32 : i32 to index
    %c0_102 = arith.constant 0 : index
    %c0_103 = arith.constant 0 : index
    %233 = vector.load %arg18[%232, %c0_102, %c0_103] : memref<2x1x64xf32, #tpu.memory_space<vmem>>, vector<1x1x64xf32>
    %234 = vector.shape_cast %233 : vector<1x1x64xf32> to vector<1x64xf32>
    %cst_104 = arith.constant dense<0.000000e+00> : vector<8xf32>
    %235 = vector.multi_reduction <add>, %228, %cst_104 [1] : vector<8x64xf32> to vector<8xf32>
    %236 = vector.shape_cast %235 : vector<8xf32> to vector<8x1xf32>
    %cst_105 = arith.constant 6.400000e+01 : f32
    %237 = vector.broadcast %cst_105 : f32 to vector<8x1xf32>
    %238 = arith.divf %236, %237 : vector<8x1xf32>
    %239 = vector.broadcast %238 : vector<8x1xf32> to vector<8x64xf32>
    %240 = arith.subf %228, %239 : vector<8x64xf32>
    %241 = arith.mulf %240, %240 : vector<8x64xf32>
    %cst_106 = arith.constant dense<0.000000e+00> : vector<8xf32>
    %242 = vector.multi_reduction <add>, %241, %cst_106 [1] : vector<8x64xf32> to vector<8xf32>
    %243 = vector.shape_cast %242 : vector<8xf32> to vector<8x1xf32>
    %cst_107 = arith.constant 6.400000e+01 : f32
    %244 = vector.broadcast %cst_107 : f32 to vector<8x1xf32>
    %245 = arith.divf %243, %244 : vector<8x1xf32>
    %cst_108 = arith.constant 9.99999996E-13 : f32
    %246 = vector.broadcast %cst_108 : f32 to vector<8x1xf32>
    %247 = arith.addf %245, %246 : vector<8x1xf32>
    %248 = math.rsqrt %247 : vector<8x1xf32>
    %249 = vector.broadcast %248 : vector<8x1xf32> to vector<8x64xf32>
    %250 = arith.mulf %240, %249 : vector<8x64xf32>
    %251 = vector.broadcast %231 : vector<1x64xf32> to vector<8x64xf32>
    %252 = arith.mulf %250, %251 : vector<8x64xf32>
    %253 = vector.broadcast %234 : vector<1x64xf32> to vector<8x64xf32>
    %254 = arith.addf %252, %253 : vector<8x64xf32>
    %c1_i32 = arith.constant 1 : i32
    %255 = arith.index_cast %c1_i32 : i32 to index
    %c0_109 = arith.constant 0 : index
    %c0_110 = arith.constant 0 : index
    %256 = vector.load %arg7[%255, %c0_109, %c0_110] : memref<2x64x192xf32, #tpu.memory_space<vmem>>, vector<1x64x192xf32>
    %257 = vector.shape_cast %256 : vector<1x64x192xf32> to vector<64x192xf32>
    %cst_111 = arith.constant dense<0.000000e+00> : vector<8x192xf32>
    %258 = tpu.matmul %254, %257, %cst_111 {dimension_numbers = #tpu.dot_dimension_numbers<[1], [0], [0], [1], [0, 0, 1, 1], [], []>} : vector<8x64xf32>, vector<64x192xf32>, vector<8x192xf32> -> vector<8x192xf32>
    %259 = arith.index_cast %c1_i32 : i32 to index
    %c0_112 = arith.constant 0 : index
    %c0_113 = arith.constant 0 : index
    %260 = vector.load %arg8[%259, %c0_112, %c0_113] : memref<2x1x192xf32, #tpu.memory_space<vmem>>, vector<1x1x192xf32>
    %261 = vector.shape_cast %260 : vector<1x1x192xf32> to vector<1x192xf32>
    %262 = vector.broadcast %261 : vector<1x192xf32> to vector<8x192xf32>
    %263 = arith.addf %258, %262 : vector<8x192xf32>
    %264 = vector.extract_strided_slice %263 {offsets = [0, 0], sizes = [8, 16], strides = [1, 1]} : vector<8x192xf32> to vector<8x16xf32>
    %cst_114 = arith.constant 2.500000e-01 : f32
    %265 = vector.broadcast %cst_114 : f32 to vector<8x16xf32>
    %266 = arith.mulf %264, %265 : vector<8x16xf32>
    %267 = vector.extract_strided_slice %263 {offsets = [0, 64], sizes = [8, 16], strides = [1, 1]} : vector<8x192xf32> to vector<8x16xf32>
    %268 = vector.extract_strided_slice %263 {offsets = [0, 128], sizes = [8, 16], strides = [1, 1]} : vector<8x192xf32> to vector<8x16xf32>
    %cst_115 = arith.constant dense<0.000000e+00> : vector<8x8xf32>
    %269 = tpu.matmul %266, %267, %cst_115 {dimension_numbers = #tpu.dot_dimension_numbers<[1], [1], [0], [0], [0, 0, 1, 0], [], []>} : vector<8x16xf32>, vector<8x16xf32>, vector<8x8xf32> -> vector<8x8xf32>
    %270 = vector.broadcast %74 : vector<1x8xf32> to vector<8x8xf32>
    %271 = arith.addf %269, %270 : vector<8x8xf32>
    %cst_116 = arith.constant dense<0xFF800000> : vector<8xf32>
    %272 = vector.multi_reduction <maximumf>, %271, %cst_116 [1] : vector<8x8xf32> to vector<8xf32>
    %273 = vector.shape_cast %272 : vector<8xf32> to vector<8x1xf32>
    %274 = vector.broadcast %273 : vector<8x1xf32> to vector<8x8xf32>
    %275 = arith.subf %271, %274 : vector<8x8xf32>
    %276 = math.exp %275 : vector<8x8xf32>
    %cst_117 = arith.constant dense<0.000000e+00> : vector<8xf32>
    %277 = vector.multi_reduction <add>, %276, %cst_117 [1] : vector<8x8xf32> to vector<8xf32>
    %278 = vector.shape_cast %277 : vector<8xf32> to vector<8x1xf32>
    %279 = tpu.reciprocal %278 {approx = true} : vector<8x1xf32> -> vector<8x1xf32>
    %280 = vector.broadcast %279 : vector<8x1xf32> to vector<8x8xf32>
    %281 = arith.mulf %276, %280 : vector<8x8xf32>
    %cst_118 = arith.constant dense<0.000000e+00> : vector<8x16xf32>
    %282 = tpu.matmul %281, %268, %cst_118 {dimension_numbers = #tpu.dot_dimension_numbers<[1], [0], [0], [1], [0, 0, 1, 1], [], []>} : vector<8x8xf32>, vector<8x16xf32>, vector<8x16xf32> -> vector<8x16xf32>
    %283 = vector.extract_strided_slice %263 {offsets = [0, 16], sizes = [8, 16], strides = [1, 1]} : vector<8x192xf32> to vector<8x16xf32>
    %cst_119 = arith.constant 2.500000e-01 : f32
    %284 = vector.broadcast %cst_119 : f32 to vector<8x16xf32>
    %285 = arith.mulf %283, %284 : vector<8x16xf32>
    %286 = vector.extract_strided_slice %263 {offsets = [0, 80], sizes = [8, 16], strides = [1, 1]} : vector<8x192xf32> to vector<8x16xf32>
    %287 = vector.extract_strided_slice %263 {offsets = [0, 144], sizes = [8, 16], strides = [1, 1]} : vector<8x192xf32> to vector<8x16xf32>
    %cst_120 = arith.constant dense<0.000000e+00> : vector<8x8xf32>
    %288 = tpu.matmul %285, %286, %cst_120 {dimension_numbers = #tpu.dot_dimension_numbers<[1], [1], [0], [0], [0, 0, 1, 0], [], []>} : vector<8x16xf32>, vector<8x16xf32>, vector<8x8xf32> -> vector<8x8xf32>
    %289 = vector.broadcast %74 : vector<1x8xf32> to vector<8x8xf32>
    %290 = arith.addf %288, %289 : vector<8x8xf32>
    %cst_121 = arith.constant dense<0xFF800000> : vector<8xf32>
    %291 = vector.multi_reduction <maximumf>, %290, %cst_121 [1] : vector<8x8xf32> to vector<8xf32>
    %292 = vector.shape_cast %291 : vector<8xf32> to vector<8x1xf32>
    %293 = vector.broadcast %292 : vector<8x1xf32> to vector<8x8xf32>
    %294 = arith.subf %290, %293 : vector<8x8xf32>
    %295 = math.exp %294 : vector<8x8xf32>
    %cst_122 = arith.constant dense<0.000000e+00> : vector<8xf32>
    %296 = vector.multi_reduction <add>, %295, %cst_122 [1] : vector<8x8xf32> to vector<8xf32>
    %297 = vector.shape_cast %296 : vector<8xf32> to vector<8x1xf32>
    %298 = tpu.reciprocal %297 {approx = true} : vector<8x1xf32> -> vector<8x1xf32>
    %299 = vector.broadcast %298 : vector<8x1xf32> to vector<8x8xf32>
    %300 = arith.mulf %295, %299 : vector<8x8xf32>
    %cst_123 = arith.constant dense<0.000000e+00> : vector<8x16xf32>
    %301 = tpu.matmul %300, %287, %cst_123 {dimension_numbers = #tpu.dot_dimension_numbers<[1], [0], [0], [1], [0, 0, 1, 1], [], []>} : vector<8x8xf32>, vector<8x16xf32>, vector<8x16xf32> -> vector<8x16xf32>
    %302 = vector.extract_strided_slice %263 {offsets = [0, 32], sizes = [8, 16], strides = [1, 1]} : vector<8x192xf32> to vector<8x16xf32>
    %cst_124 = arith.constant 2.500000e-01 : f32
    %303 = vector.broadcast %cst_124 : f32 to vector<8x16xf32>
    %304 = arith.mulf %302, %303 : vector<8x16xf32>
    %305 = vector.extract_strided_slice %263 {offsets = [0, 96], sizes = [8, 16], strides = [1, 1]} : vector<8x192xf32> to vector<8x16xf32>
    %306 = vector.extract_strided_slice %263 {offsets = [0, 160], sizes = [8, 16], strides = [1, 1]} : vector<8x192xf32> to vector<8x16xf32>
    %cst_125 = arith.constant dense<0.000000e+00> : vector<8x8xf32>
    %307 = tpu.matmul %304, %305, %cst_125 {dimension_numbers = #tpu.dot_dimension_numbers<[1], [1], [0], [0], [0, 0, 1, 0], [], []>} : vector<8x16xf32>, vector<8x16xf32>, vector<8x8xf32> -> vector<8x8xf32>
    %308 = vector.broadcast %74 : vector<1x8xf32> to vector<8x8xf32>
    %309 = arith.addf %307, %308 : vector<8x8xf32>
    %cst_126 = arith.constant dense<0xFF800000> : vector<8xf32>
    %310 = vector.multi_reduction <maximumf>, %309, %cst_126 [1] : vector<8x8xf32> to vector<8xf32>
    %311 = vector.shape_cast %310 : vector<8xf32> to vector<8x1xf32>
    %312 = vector.broadcast %311 : vector<8x1xf32> to vector<8x8xf32>
    %313 = arith.subf %309, %312 : vector<8x8xf32>
    %314 = math.exp %313 : vector<8x8xf32>
    %cst_127 = arith.constant dense<0.000000e+00> : vector<8xf32>
    %315 = vector.multi_reduction <add>, %314, %cst_127 [1] : vector<8x8xf32> to vector<8xf32>
    %316 = vector.shape_cast %315 : vector<8xf32> to vector<8x1xf32>
    %317 = tpu.reciprocal %316 {approx = true} : vector<8x1xf32> -> vector<8x1xf32>
    %318 = vector.broadcast %317 : vector<8x1xf32> to vector<8x8xf32>
    %319 = arith.mulf %314, %318 : vector<8x8xf32>
    %cst_128 = arith.constant dense<0.000000e+00> : vector<8x16xf32>
    %320 = tpu.matmul %319, %306, %cst_128 {dimension_numbers = #tpu.dot_dimension_numbers<[1], [0], [0], [1], [0, 0, 1, 1], [], []>} : vector<8x8xf32>, vector<8x16xf32>, vector<8x16xf32> -> vector<8x16xf32>
    %321 = vector.extract_strided_slice %263 {offsets = [0, 48], sizes = [8, 16], strides = [1, 1]} : vector<8x192xf32> to vector<8x16xf32>
    %cst_129 = arith.constant 2.500000e-01 : f32
    %322 = vector.broadcast %cst_129 : f32 to vector<8x16xf32>
    %323 = arith.mulf %321, %322 : vector<8x16xf32>
    %324 = vector.extract_strided_slice %263 {offsets = [0, 112], sizes = [8, 16], strides = [1, 1]} : vector<8x192xf32> to vector<8x16xf32>
    %325 = vector.extract_strided_slice %263 {offsets = [0, 176], sizes = [8, 16], strides = [1, 1]} : vector<8x192xf32> to vector<8x16xf32>
    %cst_130 = arith.constant dense<0.000000e+00> : vector<8x8xf32>
    %326 = tpu.matmul %323, %324, %cst_130 {dimension_numbers = #tpu.dot_dimension_numbers<[1], [1], [0], [0], [0, 0, 1, 0], [], []>} : vector<8x16xf32>, vector<8x16xf32>, vector<8x8xf32> -> vector<8x8xf32>
    %327 = vector.broadcast %74 : vector<1x8xf32> to vector<8x8xf32>
    %328 = arith.addf %326, %327 : vector<8x8xf32>
    %cst_131 = arith.constant dense<0xFF800000> : vector<8xf32>
    %329 = vector.multi_reduction <maximumf>, %328, %cst_131 [1] : vector<8x8xf32> to vector<8xf32>
    %330 = vector.shape_cast %329 : vector<8xf32> to vector<8x1xf32>
    %331 = vector.broadcast %330 : vector<8x1xf32> to vector<8x8xf32>
    %332 = arith.subf %328, %331 : vector<8x8xf32>
    %333 = math.exp %332 : vector<8x8xf32>
    %cst_132 = arith.constant dense<0.000000e+00> : vector<8xf32>
    %334 = vector.multi_reduction <add>, %333, %cst_132 [1] : vector<8x8xf32> to vector<8xf32>
    %335 = vector.shape_cast %334 : vector<8xf32> to vector<8x1xf32>
    %336 = tpu.reciprocal %335 {approx = true} : vector<8x1xf32> -> vector<8x1xf32>
    %337 = vector.broadcast %336 : vector<8x1xf32> to vector<8x8xf32>
    %338 = arith.mulf %333, %337 : vector<8x8xf32>
    %cst_133 = arith.constant dense<0.000000e+00> : vector<8x16xf32>
    %339 = tpu.matmul %338, %325, %cst_133 {dimension_numbers = #tpu.dot_dimension_numbers<[1], [0], [0], [1], [0, 0, 1, 1], [], []>} : vector<8x8xf32>, vector<8x16xf32>, vector<8x16xf32> -> vector<8x16xf32>
    %340 = tpu.concatenate %282, %301, %320, %339 in 1 : vector<8x16xf32>, vector<8x16xf32>, vector<8x16xf32>, vector<8x16xf32> -> vector<8x64xf32>
    %341 = arith.index_cast %c1_i32 : i32 to index
    %c0_134 = arith.constant 0 : index
    %c0_135 = arith.constant 0 : index
    %342 = vector.load %arg9[%341, %c0_134, %c0_135] : memref<2x64x64xf32, #tpu.memory_space<vmem>>, vector<1x64x64xf32>
    %343 = vector.shape_cast %342 : vector<1x64x64xf32> to vector<64x64xf32>
    %cst_136 = arith.constant dense<0.000000e+00> : vector<8x64xf32>
    %344 = tpu.matmul %340, %343, %cst_136 {dimension_numbers = #tpu.dot_dimension_numbers<[1], [0], [0], [1], [0, 0, 1, 1], [], []>} : vector<8x64xf32>, vector<64x64xf32>, vector<8x64xf32> -> vector<8x64xf32>
    %345 = arith.index_cast %c1_i32 : i32 to index
    %c0_137 = arith.constant 0 : index
    %c0_138 = arith.constant 0 : index
    %346 = vector.load %arg10[%345, %c0_137, %c0_138] : memref<2x1x64xf32, #tpu.memory_space<vmem>>, vector<1x1x64xf32>
    %347 = vector.shape_cast %346 : vector<1x1x64xf32> to vector<1x64xf32>
    %348 = vector.broadcast %347 : vector<1x64xf32> to vector<8x64xf32>
    %349 = arith.addf %344, %348 : vector<8x64xf32>
    %350 = arith.addf %349, %254 : vector<8x64xf32>
    %351 = arith.index_cast %c1_i32 : i32 to index
    %c0_139 = arith.constant 0 : index
    %c0_140 = arith.constant 0 : index
    %352 = vector.load %arg11[%351, %c0_139, %c0_140] : memref<2x1x64xf32, #tpu.memory_space<vmem>>, vector<1x1x64xf32>
    %353 = vector.shape_cast %352 : vector<1x1x64xf32> to vector<1x64xf32>
    %354 = arith.index_cast %c1_i32 : i32 to index
    %c0_141 = arith.constant 0 : index
    %c0_142 = arith.constant 0 : index
    %355 = vector.load %arg12[%354, %c0_141, %c0_142] : memref<2x1x64xf32, #tpu.memory_space<vmem>>, vector<1x1x64xf32>
    %356 = vector.shape_cast %355 : vector<1x1x64xf32> to vector<1x64xf32>
    %cst_143 = arith.constant dense<0.000000e+00> : vector<8xf32>
    %357 = vector.multi_reduction <add>, %350, %cst_143 [1] : vector<8x64xf32> to vector<8xf32>
    %358 = vector.shape_cast %357 : vector<8xf32> to vector<8x1xf32>
    %cst_144 = arith.constant 6.400000e+01 : f32
    %359 = vector.broadcast %cst_144 : f32 to vector<8x1xf32>
    %360 = arith.divf %358, %359 : vector<8x1xf32>
    %361 = vector.broadcast %360 : vector<8x1xf32> to vector<8x64xf32>
    %362 = arith.subf %350, %361 : vector<8x64xf32>
    %363 = arith.mulf %362, %362 : vector<8x64xf32>
    %cst_145 = arith.constant dense<0.000000e+00> : vector<8xf32>
    %364 = vector.multi_reduction <add>, %363, %cst_145 [1] : vector<8x64xf32> to vector<8xf32>
    %365 = vector.shape_cast %364 : vector<8xf32> to vector<8x1xf32>
    %cst_146 = arith.constant 6.400000e+01 : f32
    %366 = vector.broadcast %cst_146 : f32 to vector<8x1xf32>
    %367 = arith.divf %365, %366 : vector<8x1xf32>
    %cst_147 = arith.constant 9.99999996E-13 : f32
    %368 = vector.broadcast %cst_147 : f32 to vector<8x1xf32>
    %369 = arith.addf %367, %368 : vector<8x1xf32>
    %370 = math.rsqrt %369 : vector<8x1xf32>
    %371 = vector.broadcast %370 : vector<8x1xf32> to vector<8x64xf32>
    %372 = arith.mulf %362, %371 : vector<8x64xf32>
    %373 = vector.broadcast %353 : vector<1x64xf32> to vector<8x64xf32>
    %374 = arith.mulf %372, %373 : vector<8x64xf32>
    %375 = vector.broadcast %356 : vector<1x64xf32> to vector<8x64xf32>
    %376 = arith.addf %374, %375 : vector<8x64xf32>
    %377 = arith.index_cast %c1_i32 : i32 to index
    %c0_148 = arith.constant 0 : index
    %c0_149 = arith.constant 0 : index
    %378 = vector.load %arg13[%377, %c0_148, %c0_149] : memref<2x64x128xf32, #tpu.memory_space<vmem>>, vector<1x64x128xf32>
    %379 = vector.shape_cast %378 : vector<1x64x128xf32> to vector<64x128xf32>
    %cst_150 = arith.constant dense<0.000000e+00> : vector<8x128xf32>
    %380 = tpu.matmul %376, %379, %cst_150 {dimension_numbers = #tpu.dot_dimension_numbers<[1], [0], [0], [1], [0, 0, 1, 1], [], []>} : vector<8x64xf32>, vector<64x128xf32>, vector<8x128xf32> -> vector<8x128xf32>
    %381 = arith.index_cast %c1_i32 : i32 to index
    %c0_151 = arith.constant 0 : index
    %c0_152 = arith.constant 0 : index
    %382 = vector.load %arg14[%381, %c0_151, %c0_152] : memref<2x1x128xf32, #tpu.memory_space<vmem>>, vector<1x1x128xf32>
    %383 = vector.shape_cast %382 : vector<1x1x128xf32> to vector<1x128xf32>
    %384 = vector.broadcast %383 : vector<1x128xf32> to vector<8x128xf32>
    %385 = arith.addf %380, %384 : vector<8x128xf32>
    %cst_153 = arith.constant 5.000000e-01 : f32
    %386 = vector.broadcast %cst_153 : f32 to vector<8x128xf32>
    %387 = arith.mulf %386, %385 : vector<8x128xf32>
    %cst_154 = arith.constant 4.471500e-02 : f32
    %388 = vector.broadcast %cst_154 : f32 to vector<8x128xf32>
    %389 = arith.mulf %388, %385 : vector<8x128xf32>
    %390 = arith.mulf %389, %385 : vector<8x128xf32>
    %391 = arith.mulf %390, %385 : vector<8x128xf32>
    %392 = arith.addf %385, %391 : vector<8x128xf32>
    %cst_155 = arith.constant 0.797884583 : f32
    %393 = vector.broadcast %cst_155 : f32 to vector<8x128xf32>
    %394 = arith.mulf %393, %392 : vector<8x128xf32>
    %395 = math.tanh %394 : vector<8x128xf32>
    %cst_156 = arith.constant 1.000000e+00 : f32
    %396 = vector.broadcast %cst_156 : f32 to vector<8x128xf32>
    %397 = arith.addf %396, %395 : vector<8x128xf32>
    %398 = arith.mulf %387, %397 : vector<8x128xf32>
    %399 = arith.index_cast %c1_i32 : i32 to index
    %c0_157 = arith.constant 0 : index
    %c0_158 = arith.constant 0 : index
    %400 = vector.load %arg15[%399, %c0_157, %c0_158] : memref<2x128x64xf32, #tpu.memory_space<vmem>>, vector<1x128x64xf32>
    %401 = vector.shape_cast %400 : vector<1x128x64xf32> to vector<128x64xf32>
    %cst_159 = arith.constant dense<0.000000e+00> : vector<8x64xf32>
    %402 = tpu.matmul %398, %401, %cst_159 {dimension_numbers = #tpu.dot_dimension_numbers<[1], [0], [0], [1], [0, 0, 1, 1], [], []>} : vector<8x128xf32>, vector<128x64xf32>, vector<8x64xf32> -> vector<8x64xf32>
    %403 = arith.index_cast %c1_i32 : i32 to index
    %c0_160 = arith.constant 0 : index
    %c0_161 = arith.constant 0 : index
    %404 = vector.load %arg16[%403, %c0_160, %c0_161] : memref<2x1x64xf32, #tpu.memory_space<vmem>>, vector<1x1x64xf32>
    %405 = vector.shape_cast %404 : vector<1x1x64xf32> to vector<1x64xf32>
    %406 = vector.broadcast %405 : vector<1x64xf32> to vector<8x64xf32>
    %407 = arith.addf %402, %406 : vector<8x64xf32>
    %408 = arith.addf %407, %376 : vector<8x64xf32>
    %409 = arith.index_cast %c1_i32 : i32 to index
    %c0_162 = arith.constant 0 : index
    %c0_163 = arith.constant 0 : index
    %410 = vector.load %arg17[%409, %c0_162, %c0_163] : memref<2x1x64xf32, #tpu.memory_space<vmem>>, vector<1x1x64xf32>
    %411 = vector.shape_cast %410 : vector<1x1x64xf32> to vector<1x64xf32>
    %412 = arith.index_cast %c1_i32 : i32 to index
    %c0_164 = arith.constant 0 : index
    %c0_165 = arith.constant 0 : index
    %413 = vector.load %arg18[%412, %c0_164, %c0_165] : memref<2x1x64xf32, #tpu.memory_space<vmem>>, vector<1x1x64xf32>
    %414 = vector.shape_cast %413 : vector<1x1x64xf32> to vector<1x64xf32>
    %cst_166 = arith.constant dense<0.000000e+00> : vector<8xf32>
    %415 = vector.multi_reduction <add>, %408, %cst_166 [1] : vector<8x64xf32> to vector<8xf32>
    %416 = vector.shape_cast %415 : vector<8xf32> to vector<8x1xf32>
    %cst_167 = arith.constant 6.400000e+01 : f32
    %417 = vector.broadcast %cst_167 : f32 to vector<8x1xf32>
    %418 = arith.divf %416, %417 : vector<8x1xf32>
    %419 = vector.broadcast %418 : vector<8x1xf32> to vector<8x64xf32>
    %420 = arith.subf %408, %419 : vector<8x64xf32>
    %421 = arith.mulf %420, %420 : vector<8x64xf32>
    %cst_168 = arith.constant dense<0.000000e+00> : vector<8xf32>
    %422 = vector.multi_reduction <add>, %421, %cst_168 [1] : vector<8x64xf32> to vector<8xf32>
    %423 = vector.shape_cast %422 : vector<8xf32> to vector<8x1xf32>
    %cst_169 = arith.constant 6.400000e+01 : f32
    %424 = vector.broadcast %cst_169 : f32 to vector<8x1xf32>
    %425 = arith.divf %423, %424 : vector<8x1xf32>
    %cst_170 = arith.constant 9.99999996E-13 : f32
    %426 = vector.broadcast %cst_170 : f32 to vector<8x1xf32>
    %427 = arith.addf %425, %426 : vector<8x1xf32>
    %428 = math.rsqrt %427 : vector<8x1xf32>
    %429 = vector.broadcast %428 : vector<8x1xf32> to vector<8x64xf32>
    %430 = arith.mulf %420, %429 : vector<8x64xf32>
    %431 = vector.broadcast %411 : vector<1x64xf32> to vector<8x64xf32>
    %432 = arith.mulf %430, %431 : vector<8x64xf32>
    %433 = vector.broadcast %414 : vector<1x64xf32> to vector<8x64xf32>
    %434 = arith.addf %432, %433 : vector<8x64xf32>
    %c2_i32 = arith.constant 2 : i32
    %c0_171 = arith.constant 0 : index
    %c0_172 = arith.constant 0 : index
    %435 = vector.load %arg19[%c0_171, %c0_172] : memref<64x128xf32, #tpu.memory_space<vmem>>, vector<64x128xf32>
    %cst_173 = arith.constant dense<0.000000e+00> : vector<8x128xf32>
    %436 = tpu.matmul %434, %435, %cst_173 {dimension_numbers = #tpu.dot_dimension_numbers<[1], [0], [0], [1], [0, 0, 1, 1], [], []>} : vector<8x64xf32>, vector<64x128xf32>, vector<8x128xf32> -> vector<8x128xf32>
    %c0_174 = arith.constant 0 : index
    %c0_175 = arith.constant 0 : index
    %437 = vector.load %arg20[%c0_174, %c0_175] : memref<1x128xf32, #tpu.memory_space<vmem>>, vector<1x128xf32>
    %438 = vector.broadcast %437 : vector<1x128xf32> to vector<8x128xf32>
    %439 = arith.addf %436, %438 : vector<8x128xf32>
    %c0_176 = arith.constant 0 : index
    %c0_177 = arith.constant 0 : index
    %c0_178 = arith.constant 0 : index
    %440 = vector.load %arg21[%c0_176, %c0_177, %c0_178] : memref<1x8x128xf32, #tpu.memory_space<vmem>>, vector<1x8x128xf32>
    %441 = vector.shape_cast %440 : vector<1x8x128xf32> to vector<8x128xf32>
    %442 = vector.shape_cast %439 : vector<8x128xf32> to vector<1x8x128xf32>
    tpu.vector_store %arg21[%c0_176, %c0_177, %c0_178], %442 {strides = array<i32>} : memref<1x8x128xf32, #tpu.memory_space<vmem>>, vector<1x8x128xf32>,
    return
  }
  func.func @transform_0(%arg0: i32, %arg1: memref<2x8xi32, #tpu.memory_space<smem>>) -> (i32, i32, i32) {
    %c0_i32 = arith.constant 0 : i32
    %c0_i32_0 = arith.constant 0 : i32
    %c0_i32_1 = arith.constant 0 : i32
    return %arg0, %c0_i32, %c0_i32_0 : i32, i32, i32
  }
  func.func @transform_1(%arg0: i32, %arg1: memref<2x8xi32, #tpu.memory_space<smem>>) -> (i32, i32, i32) {
    %c0_i32 = arith.constant 0 : i32
    %c0_i32_0 = arith.constant 0 : i32
    %c0_i32_1 = arith.constant 0 : i32
    %c0_i32_2 = arith.constant 0 : i32
    return %c0_i32, %c0_i32_0, %c0_i32_1 : i32, i32, i32
  }
  func.func @transform_2(%arg0: i32, %arg1: memref<2x8xi32, #tpu.memory_space<smem>>) -> (i32, i32) {
    %c0_i32 = arith.constant 0 : i32
    %c0_i32_0 = arith.constant 0 : i32
    %c0_i32_1 = arith.constant 0 : i32
    return %c0_i32, %c0_i32_0 : i32, i32
  }
  func.func @transform_3(%arg0: i32, %arg1: memref<2x8xi32, #tpu.memory_space<smem>>) -> (i32, i32) {
    %c0_i32 = arith.constant 0 : i32
    %c0_i32_0 = arith.constant 0 : i32
    %c0_i32_1 = arith.constant 0 : i32
    return %c0_i32, %c0_i32_0 : i32, i32
  }
  func.func @transform_4(%arg0: i32, %arg1: memref<2x8xi32, #tpu.memory_space<smem>>) -> (i32, i32) {
    %c0_i32 = arith.constant 0 : i32
    %c0_i32_0 = arith.constant 0 : i32
    %c0_i32_1 = arith.constant 0 : i32
    return %c0_i32, %c0_i32_0 : i32, i32
  }
  func.func @transform_5(%arg0: i32, %arg1: memref<2x8xi32, #tpu.memory_space<smem>>) -> (i32, i32, i32) {
    %c0_i32 = arith.constant 0 : i32
    %c0_i32_0 = arith.constant 0 : i32
    %c0_i32_1 = arith.constant 0 : i32
    %c0_i32_2 = arith.constant 0 : i32
    return %c0_i32, %c0_i32_0, %c0_i32_1 : i32, i32, i32
  }
  func.func @transform_6(%arg0: i32, %arg1: memref<2x8xi32, #tpu.memory_space<smem>>) -> (i32, i32, i32) {
    %c0_i32 = arith.constant 0 : i32
    %c0_i32_0 = arith.constant 0 : i32
    %c0_i32_1 = arith.constant 0 : i32
    %c0_i32_2 = arith.constant 0 : i32
    return %c0_i32, %c0_i32_0, %c0_i32_1 : i32, i32, i32
  }
  func.func @transform_7(%arg0: i32, %arg1: memref<2x8xi32, #tpu.memory_space<smem>>) -> (i32, i32, i32) {
    %c0_i32 = arith.constant 0 : i32
    %c0_i32_0 = arith.constant 0 : i32
    %c0_i32_1 = arith.constant 0 : i32
    %c0_i32_2 = arith.constant 0 : i32
    return %c0_i32, %c0_i32_0, %c0_i32_1 : i32, i32, i32
  }
  func.func @transform_8(%arg0: i32, %arg1: memref<2x8xi32, #tpu.memory_space<smem>>) -> (i32, i32, i32) {
    %c0_i32 = arith.constant 0 : i32
    %c0_i32_0 = arith.constant 0 : i32
    %c0_i32_1 = arith.constant 0 : i32
    %c0_i32_2 = arith.constant 0 : i32
    return %c0_i32, %c0_i32_0, %c0_i32_1 : i32, i32, i32
  }
  func.func @transform_9(%arg0: i32, %arg1: memref<2x8xi32, #tpu.memory_space<smem>>) -> (i32, i32, i32) {
    %c0_i32 = arith.constant 0 : i32
    %c0_i32_0 = arith.constant 0 : i32
    %c0_i32_1 = arith.constant 0 : i32
    %c0_i32_2 = arith.constant 0 : i32
    return %c0_i32, %c0_i32_0, %c0_i32_1 : i32, i32, i32
  }
  func.func @transform_10(%arg0: i32, %arg1: memref<2x8xi32, #tpu.memory_space<smem>>) -> (i32, i32, i32) {
    %c0_i32 = arith.constant 0 : i32
    %c0_i32_0 = arith.constant 0 : i32
    %c0_i32_1 = arith.constant 0 : i32
    %c0_i32_2 = arith.constant 0 : i32
    return %c0_i32, %c0_i32_0, %c0_i32_1 : i32, i32, i32
  }
  func.func @transform_11(%arg0: i32, %arg1: memref<2x8xi32, #tpu.memory_space<smem>>) -> (i32, i32, i32) {
    %c0_i32 = arith.constant 0 : i32
    %c0_i32_0 = arith.constant 0 : i32
    %c0_i32_1 = arith.constant 0 : i32
    %c0_i32_2 = arith.constant 0 : i32
    return %c0_i32, %c0_i32_0, %c0_i32_1 : i32, i32, i32
  }
  func.func @transform_12(%arg0: i32, %arg1: memref<2x8xi32, #tpu.memory_space<smem>>) -> (i32, i32, i32) {
    %c0_i32 = arith.constant 0 : i32
    %c0_i32_0 = arith.constant 0 : i32
    %c0_i32_1 = arith.constant 0 : i32
    %c0_i32_2 = arith.constant 0 : i32
    return %c0_i32, %c0_i32_0, %c0_i32_1 : i32, i32, i32
  }
  func.func @transform_13(%arg0: i32, %arg1: memref<2x8xi32, #tpu.memory_space<smem>>) -> (i32, i32, i32) {
    %c0_i32 = arith.constant 0 : i32
    %c0_i32_0 = arith.constant 0 : i32
    %c0_i32_1 = arith.constant 0 : i32
    %c0_i32_2 = arith.constant 0 : i32
    return %c0_i32, %c0_i32_0, %c0_i32_1 : i32, i32, i32
  }
  func.func @transform_14(%arg0: i32, %arg1: memref<2x8xi32, #tpu.memory_space<smem>>) -> (i32, i32, i32) {
    %c0_i32 = arith.constant 0 : i32
    %c0_i32_0 = arith.constant 0 : i32
    %c0_i32_1 = arith.constant 0 : i32
    %c0_i32_2 = arith.constant 0 : i32
    return %c0_i32, %c0_i32_0, %c0_i32_1 : i32, i32, i32
  }
  func.func @transform_15(%arg0: i32, %arg1: memref<2x8xi32, #tpu.memory_space<smem>>) -> (i32, i32, i32) {
    %c0_i32 = arith.constant 0 : i32
    %c0_i32_0 = arith.constant 0 : i32
    %c0_i32_1 = arith.constant 0 : i32
    %c0_i32_2 = arith.constant 0 : i32
    return %c0_i32, %c0_i32_0, %c0_i32_1 : i32, i32, i32
  }
  func.func @transform_16(%arg0: i32, %arg1: memref<2x8xi32, #tpu.memory_space<smem>>) -> (i32, i32, i32) {
    %c0_i32 = arith.constant 0 : i32
    %c0_i32_0 = arith.constant 0 : i32
    %c0_i32_1 = arith.constant 0 : i32
    %c0_i32_2 = arith.constant 0 : i32
    return %c0_i32, %c0_i32_0, %c0_i32_1 : i32, i32, i32
  }
  func.func @transform_17(%arg0: i32, %arg1: memref<2x8xi32, #tpu.memory_space<smem>>) -> (i32, i32) {
    %c0_i32 = arith.constant 0 : i32
    %c0_i32_0 = arith.constant 0 : i32
    %c0_i32_1 = arith.constant 0 : i32
    return %c0_i32, %c0_i32_0 : i32, i32
  }
  func.func @transform_18(%arg0: i32, %arg1: memref<2x8xi32, #tpu.memory_space<smem>>) -> (i32, i32) {
    %c0_i32 = arith.constant 0 : i32
    %c0_i32_0 = arith.constant 0 : i32
    %c0_i32_1 = arith.constant 0 : i32
    return %c0_i32, %c0_i32_0 : i32, i32
  }
  func.func @transform_19(%arg0: i32, %arg1: memref<2x8xi32, #tpu.memory_space<smem>>) -> (i32, i32, i32) {
    %c0_i32 = arith.constant 0 : i32
    %c0_i32_0 = arith.constant 0 : i32
    %c0_i32_1 = arith.constant 0 : i32
    return %arg0, %c0_i32, %c0_i32_0 : i32, i32, i32
  }
}

</mosaic_0001>

<bundles_post_ra>
// kernel: xss_detector_forward.1
= control target key start
LH: loop header
LB: loop body
LE: loop exit
PB: predicated region body
PF: predicated region fallthrough
CT: control target
= control target key end

     0   :  { %s5550_s0 = inlined_call_operand.vmem [shape: s32[2,8], index: 0, kind: input, shape index: {}]   ;;  %s5551_s1 = inlined_call_operand.vmem [shape: f32[2,1,8], index: 1, kind: input, shape index: {}]   ;;  %s5552_s2 = inlined_call_operand.vmem [shape: f32[128,1,64], index: 2, kind: input, shape index: {}]   ;;  %s5553_s3 = inlined_call_operand.vmem [shape: f32[8,64], index: 3, kind: input, shape index: {}]   ;;  %s5554_s4 = inlined_call_operand.vmem [shape: f32[1,64], index: 4, kind: input, shape index: {}]   ;;  %s5555_s5 = inlined_call_operand.hbm [shape: f32[1,64], index: 5, kind: input, shape index: {}]   ;;  %s5556_s6 = inlined_call_operand.vmem [shape: f32[2,64,192], index: 6, kind: input, shape index: {}]   ;;  %s5557_s7 = inlined_call_operand.hbm [shape: f32[2,1,192], index: 7, kind: input, shape index: {}]   ;;  %s5558_s8 = inlined_call_operand.vmem [shape: f32[2,64,64], index: 8, kind: input, shape index: {}]   ;;  %s5559_s9 = inlined_call_operand.hbm [shape: f32[2,1,64], index: 9, kind: input, shape index: {}]   ;;  %s5560_s10 = inlined_call_operand.hbm [shape: f32[2,1,64], index: 10, kind: input, shape index: {}]   ;;  %s5561_s11 = inlined_call_operand.hbm [shape: f32[2,1,64], index: 11, kind: input, shape index: {}]   ;;  %s5562_s12 = inlined_call_operand.vmem [shape: f32[2,64,128], index: 12, kind: input, shape index: {}]   ;;  %s5563_s13 = inlined_call_operand.hbm [shape: f32[2,1,128], index: 13, kind: input, shape index: {}]   ;;  %s5564_s14 = inlined_call_operand.vmem [shape: f32[2,128,64], index: 14, kind: input, shape index: {}]   ;;  %s5565_s15 = inlined_call_operand.hbm [shape: f32[2,1,64], index: 15, kind: input, shape index: {}]   ;;  %s5566_s16 = inlined_call_operand.hbm [shape: f32[2,1,64], index: 16, kind: input, shape index: {}]   ;;  %s5567_s17 = inlined_call_operand.hbm [shape: f32[2,1,64], index: 17, kind: input, shape index: {}]   ;;  %s5568_s18 = inlined_call_operand.hbm [shape: f32[64,128], index: 18, kind: input, shape index: {}]   ;;  %s5569_s19 = inlined_call_operand.hbm [shape: f32[1,128], index: 19, kind: input, shape index: {}]   ;;  %s5570_s20 = inlined_call_operand.vmem [shape: f32[2,8,128], index: 20, kind: output, shape index: {}]  }
   0x1   :  { %5581 = sst [smem:[#allocation30_spill]] %s5550_s0 }
   0x2   :  { %5582 = sst [smem:[#allocation31_spill]] %s5551_s1  ;;  %s5593_s23 = sld [smem:[#allocation30_spill]] }
   0x3   :  { %5583 = sst [smem:[#allocation32_spill]] %s5552_s2 }
   0x4   :  { %5584 = sst [smem:[#allocation33_spill]] %s5553_s3 }
   0x5   :  { %5585 = sst [smem:[#allocation34_spill]] %s5554_s4 }
   0x6   :  { %5586 = sst [smem:[#allocation35_spill]] %s5555_s5 }
   0x7   :  { %5587 = sst [smem:[#allocation36_spill]] %s5557_s7 }
   0x8   :  { %5588 = sst [smem:[#allocation37_spill]] %s5559_s9 }
   0x9   :  { %5589 = sst [smem:[#allocation38_spill]] %s5560_s10 }
   0xa   :  { %5590 = sst [smem:[#allocation39_spill]] %s5562_s12 }
   0xb   :  { %5591 = sst [smem:[#allocation40_spill]] %s5564_s14  ;;  %s25_s14 = sshll.u32 %s5593_s23, 4  ;;  %s26_s14 = int_to_ptr.vmem [resolvable:$true] %s25_s14 }
   0xc   :  { %5592 = sst [smem:[#allocation41_spill]] %s5570_s20  ;;  %s4144_s24 = scalar_lea.vmem %s26_s14, 32 }
   0xd   :  { %p4145_p0 = scmp.ne.s32.totalorder %s26_s14, %s4144_s24  ;;  %p4149_p1 = scmp.lt.s32.totalorder %s26_s14, %s26_s14 }
   0xe   :  { %p4150_p2 = scmp.lt.s32.totalorder %s4144_s24, %s4144_s24 }
  0x10   :  { %p4151_p3 = por %p4150_p2, %p4149_p1 }
  0x12   :  { %p4152_p4 = pnand %p4151_p3, %p4145_p0 }
  0x14   :  { %4155 = shalt.err (!%p4152_p4)  }
  0x15   :  { %s4498_s2 = smov [#allocation4]  }
  0x16   :  { %28 = dma.vmem_to_smem %s26_s14, 32, %s4498_s2, [#allocation3] }
  0x17   :  { %4468 = dma.done.wait [#allocation3], 32 }
  0x18   :  { %4469 = vsyncadd [#allocation3], 4294967264 }
  0x19   :  { %30 = sfence }
  0x1a   :  { %31 = vsyncpa [#allocation6], 0 }
  0x1b   :  { %32 = vsyncpa [#allocation8], 0 }
  0x1c   :  { %33 = vsyncpa [#allocation11], 0 }
  0x1d   :  { %34 = vsyncpa [#allocation14], 0 }
  0x1e   :  { %35 = vsyncpa [#allocation17], 0 }
  0x1f   :  { %36 = vsyncpa [#allocation20], 0  ;;  %s4634_s25 = smov 0  }
  0x20 LB: > { %5594 = sst [smem:[#allocation29_spill]] %s4496_s25  ;;  %s4499_s14 = smov [#allocation7]   ;;  %s4496_s25 = sphi %s4634_s25, %s42_s25  }
  0x21   : > { %s512_s3 = sshll.u32 %s4499_s14, 4  ;;  %s4640_s26 = sadd.s32 4294967295, %s4496_s25   ;;  %s4645_s3 = int_to_ptr.vmem [resolvable:$true] %s512_s3 }
  0x22   : > { %p3340_p5 = scmp.ge.s32.totalorder %s4496_s25, 1  ;;  %p477_p6 = scmp.lt.s32.totalorder %s4496_s25, 3 }
  0x23   : > { %p5575_p7 = scmp.eq.s32.totalorder %s4640_s26, 0  ;;  %s4500_s4 = smov [#allocation10]  }
  0x24   : > { %p4647_p8 = pnand %p3340_p5, %p477_p6  ;;  %s541_s29 = sshll.u32 %s4500_s4, 4  ;;  %s4659_s29 = int_to_ptr.vmem [resolvable:$true] %s541_s29 }
  0x25   : > { %s4501_s30 = smov [#allocation13]   ;;  %s5597_s7 = sld [smem:[#allocation36_spill]] }
  0x26   : > { %s5595_s27 = scalar_select %p4647_p8, 1, 0 }
  0x27   : > { %p4006_p9 = pneg %p4647_p8  ;;  %s570_s0 = sshll.u32 %s4501_s30, 4  ;;  %s4661_s0 = int_to_ptr.vmem [resolvable:$true] %s570_s0 }
  0x29   : > { %p4655_p10 = pnand %p5575_p7, %p4006_p9 }
  0x2b   : > { %s4156_s22 = scalar_lea.hbm %s5597_s7, 64  ;;  %p4671_p12 = pneg %p4655_p10 }
  0x2c   : > { %p4157_p11 = scmp.ne.s32.totalorder %s5597_s7, %s4156_s22  ;;  %p4163_p1 = scmp.lt.u32.totalorder %s4156_s22, %s5597_s7 }
  0x2e   : > { %p4159_p13 = pnand %p4671_p12, %p4157_p11 }
  0x30   : > { %p4160_p0 = pneg %p4159_p13 }
  0x32   : > { %p4165_p2 = pnand %p4163_p1, %p4160_p0 }
  0x34   : > { %4168 = shalt.err (!%p4165_p2)
}
  0x35   : > { %s4169_s30 = scalar_lea.vmem %s4645_s3, 64  ;;  %p4177_p6 = scmp.lt.s32.totalorder %s4645_s3, %s4645_s3 }
  0x36   : > { %p4170_p3 = scmp.ne.s32.totalorder %s4645_s3, %s4169_s30  ;;  %p4178_p9 = scmp.lt.s32.totalorder %s4169_s30, %s4169_s30 }
  0x38   : > { %p4172_p4 = pnand %p4170_p3, %p4671_p12  ;;  %p4179_p11 = por %p4178_p9, %p4177_p6 }
  0x3a   : > { %p4173_p5 = pneg %p4172_p4 }
  0x3c   : > { %p4180_p13 = pnand %p4179_p11, %p4173_p5 }
  0x3e   : > { %4183 = shalt.err (!%p4180_p13)
}
  0x3f   : > { %s4502_s21 = smov 32   ;;  %s4503_s1 = smov 2  }
  0x40   : > { %4012 = dma.hbm_to_vmem [thread:$0]  (!%p4655_p10), %s5597_s7, 64, %s4645_s3, [#allocation8], %s4502_s21, %s4502_s21, %s4503_s1  }
  0x41   : > { %s5599_s10 = sld [smem:[#allocation38_spill]] }
  0x47   : > { %s4184_s4 = scalar_lea.hbm %s5599_s10, 32 }
  0x48   : > { %p4185_p0 = scmp.ne.s32.totalorder %s5599_s10, %s4184_s4  ;;  %p4191_p3 = scmp.lt.u32.totalorder %s4184_s4, %s5599_s10 }
  0x4a   : > { %p4187_p1 = pnand %p4185_p0, %p4671_p12 }
  0x4c   : > { %p4188_p2 = pneg %p4187_p1 }
  0x4e   : > { %p4193_p4 = pnand %p4191_p3, %p4188_p2 }
  0x50   : > { %4196 = shalt.err (!%p4193_p4)
}
  0x51   : > { %s4197_s3 = scalar_lea.vmem %s4659_s29, 32  ;;  %p4205_p11 = scmp.lt.s32.totalorder %s4659_s29, %s4659_s29 }
  0x52   : > { %p4198_p5 = scmp.ne.s32.totalorder %s4659_s29, %s4197_s3  ;;  %p4206_p13 = scmp.lt.s32.totalorder %s4197_s3, %s4197_s3 }
  0x54   : > { %p4200_p6 = pnand %p4198_p5, %p4671_p12  ;;  %p4207_p0 = por %p4206_p13, %p4205_p11 }
  0x56   : > { %p4201_p9 = pneg %p4200_p6 }
  0x58   : > { %p4208_p1 = pnand %p4207_p0, %p4201_p9 }
  0x5a   : > { %4211 = shalt.err (!%p4208_p1)
}
  0x5b   : > { %s5577_s20 = smov 16   ;;  %s5579_s12 = smov 1  }
  0x5c   : > { %4018 = dma.hbm_to_vmem [thread:$0]  (!%p4655_p10), %s5599_s10, 32, %s4659_s29, [#allocation11], %s5577_s20, %s5577_s20, %s5579_s12  }
  0x5d   : > { %s4212_s23 = scalar_lea.hbm %s5563_s13, 32 }
  0x5e   : > { %p4213_p2 = scmp.ne.s32.totalorder %s5563_s13, %s4212_s23  ;;  %p4219_p5 = scmp.lt.u32.totalorder %s4212_s23, %s5563_s13 }
  0x60   : > { %p4215_p3 = pnand %p4213_p2, %p4671_p12 }
  0x62   : > { %p4216_p4 = pneg %p4215_p3 }
  0x64   : > { %p4221_p6 = pnand %p4219_p5, %p4216_p4 }
  0x66   : > { %4224 = shalt.err (!%p4221_p6)
}
  0x67   : > { %s4225_s29 = scalar_lea.vmem %s4661_s0, 32  ;;  %p4233_p0 = scmp.lt.s32.totalorder %s4661_s0, %s4661_s0 }
  0x68   : > { %p4226_p9 = scmp.ne.s32.totalorder %s4661_s0, %s4225_s29  ;;  %p4234_p1 = scmp.lt.s32.totalorder %s4225_s29, %s4225_s29 }
  0x6a   : > { %p4228_p11 = pnand %p4226_p9, %p4671_p12  ;;  %p4235_p2 = por %p4234_p1, %p4233_p0 }
  0x6c   : > { %p4229_p13 = pneg %p4228_p11 }
  0x6e   : > { %p4236_p3 = pnand %p4235_p2, %p4229_p13 }
  0x70   : > { %4239 = shalt.err (!%p4236_p3)
}
  0x71   : > { %4024 = dma.hbm_to_vmem [thread:$0]  (!%p4655_p10), %s5563_s13, 32, %s4661_s0, [#allocation14], %s5577_s20, %s5577_s20, %s5579_s12  }
  0x72   : > { %s4506_s21 = smov [#allocation16]   ;;  %s4507_s22 = smov [#allocation19]  }
  0x73   : > { %s599_s1 = sshll.u32 %s4506_s21, 4  ;;  %s625_s23 = sshll.u32 %s4507_s22, 4  ;;  %s600_s1 = int_to_ptr.vmem [resolvable:$true] %s599_s1  ;;  %s4744_s23 = int_to_ptr.vmem [resolvable:$true] %s625_s23 }
  0x74   : > { %s4240_s4 = scalar_lea.hbm %s5566_s16, 32 }
  0x75   : > { %p4241_p4 = scmp.ne.s32.totalorder %s5566_s16, %s4240_s4  ;;  %p4247_p9 = scmp.lt.u32.totalorder %s4240_s4, %s5566_s16 }
  0x77   : > { %p4243_p5 = pnand %p4241_p4, %p4671_p12 }
  0x79   : > { %p4244_p6 = pneg %p4243_p5 }
  0x7b   : > { %p4249_p11 = pnand %p4247_p9, %p4244_p6 }
  0x7d   : > { %4252 = shalt.err (!%p4249_p11)
}
  0x7e   : > { %s4253_s25 = scalar_lea.vmem %s600_s1, 32  ;;  %p4261_p2 = scmp.lt.s32.totalorder %s600_s1, %s600_s1 }
  0x7f   : > { %p4254_p13 = scmp.ne.s32.totalorder %s600_s1, %s4253_s25  ;;  %p4262_p3 = scmp.lt.s32.totalorder %s4253_s25, %s4253_s25 }
  0x81   : > { %p4256_p0 = pnand %p4254_p13, %p4671_p12  ;;  %p4263_p7 = por %p4262_p3, %p4261_p2 }
  0x83   : > { %p4257_p1 = pneg %p4256_p0 }
  0x85   : > { %p4264_p8 = pnand %p4263_p7, %p4257_p1 }
  0x87   : > { %4267 = shalt.err (!%p4264_p8)
}
  0x88   : > { %4030 = dma.hbm_to_vmem [thread:$0]  (!%p4655_p10), %s5566_s16, 32, %s600_s1, [#allocation17], %s5577_s20, %s5577_s20, %s5579_s12  }
  0x89   : > { %s4268_s4 = scalar_lea.hbm %s5568_s18, 1024 }
  0x8a   : > { %p4269_p4 = scmp.ne.s32.totalorder %s5568_s18, %s4268_s4  ;;  %p4275_p5 = scmp.lt.u32.totalorder %s4268_s4, %s5568_s18 }
  0x8c   : > { %p4271_p7 = pnand %p4269_p4, %p4671_p12 }
  0x8e   : > { %p4272_p8 = pneg %p4271_p7 }
  0x90   : > { %p4277_p6 = pnand %p4275_p5, %p4272_p8 }
  0x92   : > { %4280 = shalt.err (!%p4277_p6)
}
  0x93   : > { %s4281_s1 = scalar_lea.vmem %s4744_s23, 1024  ;;  %p4289_p0 = scmp.lt.s32.totalorder %s4744_s23, %s4744_s23 }
  0x94   : > { %p4282_p9 = scmp.ne.s32.totalorder %s4744_s23, %s4281_s1  ;;  %p4290_p1 = scmp.lt.s32.totalorder %s4281_s1, %s4281_s1 }
  0x96   : > { %p4284_p11 = pnand %p4282_p9, %p4671_p12  ;;  %p4291_p2 = por %p4290_p1, %p4289_p0 }
  0x98   : > { %p4285_p13 = pneg %p4284_p11 }
  0x9a   : > { %p4292_p3 = pnand %p4291_p2, %p4285_p13 }
  0x9c   : > { %4295 = shalt.err (!%p4292_p3)
}
  0x9d   : > { %s4508_s25 = smov 128   ;;  %s4509_s21 = smov 8  }
  0x9e   : > { %4036 = dma.hbm_to_vmem [thread:$0]  (!%p4655_p10), %s5568_s18, 1024, %s4744_s23, [#allocation20], %s4508_s25, %s4508_s25, %s4509_s21  }
  0x9f   : > { %s4510_s14 = smov [#allocation5]   ;;  %s4511_s30 = smov [#allocation9]  }
  0xa0   : > { %s499_s4 = sshll.u32 %s4510_s14, 4  ;;  %s528_s29 = sshll.u32 %s4511_s30, 4  ;;  %s500_s4 = int_to_ptr.vmem [resolvable:$true] %s499_s4  ;;  %s4790_s29 = int_to_ptr.vmem [resolvable:$true] %s528_s29 }
  0xa1   : > { %s5600_s5 = sld [smem:[#allocation35_spill]] }
  0xa7   : > { %s4296_s1 = scalar_lea.hbm %s5600_s5, 16 }
  0xa8   : > { %p4297_p4 = scmp.ne.s32.totalorder %s5600_s5, %s4296_s1  ;;  %p4303_p5 = scmp.lt.u32.totalorder %s4296_s1, %s5600_s5 }
  0xaa   : > { %p4299_p7 = pnand %p4297_p4, %p4671_p12 }
  0xac   : > { %p4300_p8 = pneg %p4299_p7 }
  0xae   : > { %p4305_p6 = pnand %p4303_p5, %p4300_p8 }
  0xb0   : > { %4308 = shalt.err (!%p4305_p6)
}
  0xb1   : > { %s4309_s25 = scalar_lea.vmem %s500_s4, 16  ;;  %s4316_s21 = scalar_lea.vmem %s500_s4, 32 }
  0xb2   : > { %p4310_p9 = scmp.ne.s32.totalorder %s500_s4, %s4309_s25  ;;  %p4317_p0 = scmp.lt.s32.totalorder %s500_s4, %s500_s4 }
  0xb3   : > { %p4318_p1 = scmp.lt.s32.totalorder %s4316_s21, %s4309_s25 }
  0xb4   : > { %p4312_p11 = pnand %p4310_p9, %p4671_p12 }
  0xb5   : > { %p4319_p2 = por %p4318_p1, %p4317_p0 }
  0xb6   : > { %p4313_p13 = pneg %p4312_p11 }
  0xb8   : > { %p4320_p3 = pnand %p4319_p2, %p4313_p13 }
  0xba   : > { %4323 = shalt.err (!%p4320_p3)
}
  0xbb   : > { %4009 = dma.hbm_to_vmem [thread:$0]  (!%p4655_p10), %s5600_s5, 16, %s500_s4, [#allocation6]  }
  0xbc   : > { %s5601_s9 = sld [smem:[#allocation37_spill]] }
  0xc2   : > { %s4324_s30 = scalar_lea.hbm %s5601_s9, 32 }
  0xc3   : > { %p4325_p4 = scmp.ne.s32.totalorder %s5601_s9, %s4324_s30  ;;  %p4331_p5 = scmp.lt.u32.totalorder %s4324_s30, %s5601_s9 }
  0xc5   : > { %p4327_p7 = pnand %p4325_p4, %p4671_p12 }
  0xc7   : > { %p4328_p8 = pneg %p4327_p7 }
  0xc9   : > { %p4333_p6 = pnand %p4331_p5, %p4328_p8 }
  0xcb   : > { %4336 = shalt.err (!%p4333_p6)
}
  0xcc   : > { %s4337_s4 = scalar_lea.vmem %s4790_s29, 32  ;;  %p4345_p0 = scmp.lt.s32.totalorder %s4790_s29, %s4790_s29 }
  0xcd   : > { %p4338_p9 = scmp.ne.s32.totalorder %s4790_s29, %s4337_s4  ;;  %p4346_p1 = scmp.lt.s32.totalorder %s4337_s4, %s4337_s4 }
  0xcf   : > { %p4340_p11 = pnand %p4338_p9, %p4671_p12  ;;  %p4347_p2 = por %p4346_p1, %p4345_p0 }
  0xd1   : > { %p4341_p13 = pneg %p4340_p11 }
  0xd3   : > { %p4348_p3 = pnand %p4347_p2, %p4341_p13 }
  0xd5   : > { %4351 = shalt.err (!%p4348_p3)
}
  0xd6   : > { %s5602_s23 = smov 1   ;;  %s5603_s25 = smov 16  }
  0xd7   : > { %4015 = dma.hbm_to_vmem [thread:$0]  (!%p4655_p10), %s5601_s9, 32, %s4790_s29, [#allocation8], %s5603_s25, %s5603_s25, %s5602_s23  }
  0xd8   : > { %s4512_s12 = smov [#allocation12]   ;;  %s4513_s14 = smov [#allocation15]  }
  0xd9   : > { %s554_s24 = sshll.u32 %s4512_s12, 4  ;;  %s586_s30 = sshll.u32 %s4513_s14, 4  ;;  %s555_s24 = int_to_ptr.vmem [resolvable:$true] %s554_s24  ;;  %s4836_s30 = int_to_ptr.vmem [resolvable:$true] %s586_s30 }
  0xda   : > { %s4352_s1 = scalar_lea.hbm %s5561_s11, 32 }
  0xdb   : > { %p4353_p4 = scmp.ne.s32.totalorder %s5561_s11, %s4352_s1  ;;  %p4359_p5 = scmp.lt.u32.totalorder %s4352_s1, %s5561_s11 }
  0xdd   : > { %p4355_p7 = pnand %p4353_p4, %p4671_p12 }
  0xdf   : > { %p4356_p8 = pneg %p4355_p7 }
  0xe1   : > { %p4361_p6 = pnand %p4359_p5, %p4356_p8 }
  0xe3   : > { %4364 = shalt.err (!%p4361_p6)
}
  0xe4   : > { %s4365_s20 = scalar_lea.vmem %s555_s24, 32  ;;  %p4373_p0 = scmp.lt.s32.totalorder %s555_s24, %s555_s24 }
  0xe5   : > { %p4366_p9 = scmp.ne.s32.totalorder %s555_s24, %s4365_s20  ;;  %p4374_p1 = scmp.lt.s32.totalorder %s4365_s20, %s4365_s20 }
  0xe7   : > { %p4368_p11 = pnand %p4366_p9, %p4671_p12  ;;  %p4375_p2 = por %p4374_p1, %p4373_p0 }
  0xe9   : > { %p4369_p13 = pneg %p4368_p11 }
  0xeb   : > { %p4376_p3 = pnand %p4375_p2, %p4369_p13 }
  0xed   : > { %4379 = shalt.err (!%p4376_p3)
}
  0xee   : > { %4021 = dma.hbm_to_vmem [thread:$0]  (!%p4655_p10), %s5561_s11, 32, %s555_s24, [#allocation11], %s5603_s25, %s5603_s25, %s5602_s23  }
  0xef   : > { %s4380_s1 = scalar_lea.hbm %s5565_s15, 32 }
  0xf0   : > { %p4381_p4 = scmp.ne.s32.totalorder %s5565_s15, %s4380_s1  ;;  %p4387_p5 = scmp.lt.u32.totalorder %s4380_s1, %s5565_s15 }
  0xf2   : > { %p4383_p7 = pnand %p4381_p4, %p4671_p12 }
  0xf4   : > { %p4384_p8 = pneg %p4383_p7 }
  0xf6   : > { %p4389_p6 = pnand %p4387_p5, %p4384_p8 }
  0xf8   : > { %4392 = shalt.err (!%p4389_p6)
}
  0xf9   : > { %s4393_s24 = scalar_lea.vmem %s4836_s30, 32  ;;  %p4401_p0 = scmp.lt.s32.totalorder %s4836_s30, %s4836_s30 }
  0xfa   : > { %p4394_p9 = scmp.ne.s32.totalorder %s4836_s30, %s4393_s24  ;;  %p4402_p1 = scmp.lt.s32.totalorder %s4393_s24, %s4393_s24 }
  0xfc   : > { %p4396_p11 = pnand %p4394_p9, %p4671_p12  ;;  %p4403_p2 = por %p4402_p1, %p4401_p0 }
  0xfe   : > { %p4397_p13 = pneg %p4396_p11 }
 0x100   : > { %p4404_p3 = pnand %p4403_p2, %p4397_p13 }
 0x102   : > { %4407 = shalt.err (!%p4404_p3)
}
 0x103   : > { %4027 = dma.hbm_to_vmem [thread:$0]  (!%p4655_p10), %s5565_s15, 32, %s4836_s30, [#allocation14], %s5603_s25, %s5603_s25, %s5602_s23  }
 0x104   : > { %s4514_s14 = smov [#allocation18]   ;;  %s4515_s0 = smov [#allocation21]  }
 0x105   : > { %s612_s3 = sshll.u32 %s4514_s14, 4  ;;  %s639_s1 = sshll.u32 %s4515_s0, 4  ;;  %s613_s3 = int_to_ptr.vmem [resolvable:$true] %s612_s3  ;;  %s4885_s1 = int_to_ptr.vmem [resolvable:$true] %s639_s1 }
 0x106   : > { %s4408_s21 = scalar_lea.hbm %s5567_s17, 32 }
 0x107   : > { %p4409_p4 = scmp.ne.s32.totalorder %s5567_s17, %s4408_s21  ;;  %p4415_p5 = scmp.lt.u32.totalorder %s4408_s21, %s5567_s17 }
 0x109   : > { %p4411_p7 = pnand %p4409_p4, %p4671_p12 }
 0x10b   : > { %p4412_p8 = pneg %p4411_p7 }
 0x10d   : > { %p4417_p6 = pnand %p4415_p5, %p4412_p8 }
 0x10f   : > { %4420 = shalt.err (!%p4417_p6)
}
 0x110   : > { %s4421_s12 = scalar_lea.vmem %s613_s3, 32  ;;  %p4429_p0 = scmp.lt.s32.totalorder %s613_s3, %s613_s3 }
 0x111   : > { %p4422_p9 = scmp.ne.s32.totalorder %s613_s3, %s4421_s12  ;;  %p4430_p1 = scmp.lt.s32.totalorder %s4421_s12, %s4421_s12 }
 0x113   : > { %p4424_p11 = pnand %p4422_p9, %p4671_p12  ;;  %p4431_p2 = por %p4430_p1, %p4429_p0 }
 0x115   : > { %p4425_p13 = pneg %p4424_p11 }
 0x117   : > { %p4432_p3 = pnand %p4431_p2, %p4425_p13 }
 0x119   : > { %4435 = shalt.err (!%p4432_p3)
}
 0x11a   : > { %4033 = dma.hbm_to_vmem [thread:$0]  (!%p4655_p10), %s5567_s17, 32, %s613_s3, [#allocation17], %s5603_s25, %s5603_s25, %s5602_s23  }
 0x11b   : > { %s4436_s21 = scalar_lea.hbm %s5569_s19, 16 }
 0x11c   : > { %p4437_p4 = scmp.ne.s32.totalorder %s5569_s19, %s4436_s21  ;;  %p4443_p5 = scmp.lt.u32.totalorder %s4436_s21, %s5569_s19 }
 0x11e   : > { %p4439_p7 = pnand %p4437_p4, %p4671_p12 }
 0x120   : > { %p4440_p8 = pneg %p4439_p7 }
 0x122   : > { %p4445_p6 = pnand %p4443_p5, %p4440_p8 }
 0x124   : > { %4448 = shalt.err (!%p4445_p6)
}
 0x125   : > { %s4449_s23 = scalar_lea.vmem %s4885_s1, 16  ;;  %s4456_s25 = scalar_lea.vmem %s4885_s1, 32 }
 0x126   : > { %p4450_p9 = scmp.ne.s32.totalorder %s4885_s1, %s4449_s23  ;;  %p4457_p0 = scmp.lt.s32.totalorder %s4885_s1, %s4885_s1 }
 0x127   : > { %p4458_p1 = scmp.lt.s32.totalorder %s4456_s25, %s4449_s23 }
 0x128   : > { %p4452_p11 = pnand %p4450_p9, %p4671_p12 }
 0x129   : > { %p4459_p2 = por %p4458_p1, %p4457_p0 }
 0x12a   : > { %p4453_p13 = pneg %p4452_p11 }
 0x12c   : > { %p4460_p3 = pnand %p4459_p2, %p4453_p13 }
 0x12e   : > { %4463 = shalt.err (!%p4460_p3)
}
 0x12f   : > { %4039 = dma.hbm_to_vmem [thread:$0]  (!%p4655_p10), %s5569_s19, 16, %s4885_s1, [#allocation20]  }
 0x130   : > { %p5604_p4 = scmp.ne.s32.totalorder %s5595_s27, 0 }
 0x131   : > { %p5605_p12 = scmp.eq.s32.totalorder (!%p5604_p4), %s4640_s26, 0 }
 0x132   : > { %658 = sbr.rel (%p5604_p4) target bundleno = 7991 (0x1f37), region = 96 }
 0x139   : > { %4471 = dma.done.wait (%p5605_p12), [#allocation6], 16   ;;  %p5606_p7 = pmov %p5605_p12 }
 0x13b   : > { %4473 = vsyncadd (%p5606_p7), [#allocation6], 4294967280  ;;  %p5607_p8 = pmov %p5606_p7 }
 0x13c   : > { %p5608_p5 = pmov %p5606_p7 }
 0x13d   : > { %4475 = dma.done.wait (%p5607_p8), [#allocation8], 96  }
 0x13e   : > { %4477 = vsyncadd (%p5608_p5), [#allocation8], 4294967200  ;;  %p5609_p6 = pmov %p5608_p5 }
 0x13f   : > { %p5610_p10 = pmov %p5608_p5 }
 0x140   : > { %4479 = dma.done.wait (%p5609_p6), [#allocation11], 64  }
 0x141   : > { %4481 = vsyncadd (%p5610_p10), [#allocation11], 4294967232  ;;  %p5611_p9 = pmov %p5608_p5 }
 0x142   : > { %p5612_p11 = pmov %p5608_p5 }
 0x143   : > { %4483 = dma.done.wait (%p5611_p9), [#allocation14], 64  }
 0x144   : > { %4485 = vsyncadd (%p5612_p11), [#allocation14], 4294967232  ;;  %p5613_p13 = pmov %p5608_p5 }
 0x145   : > { %p5614_p0 = pmov %p5608_p5 }
 0x146   : > { %4487 = dma.done.wait (%p5613_p13), [#allocation17], 64  }
 0x147   : > { %4489 = vsyncadd (%p5614_p0), [#allocation17], 4294967232  ;;  %p5615_p1 = pmov %p5614_p0 }
 0x148   : > { %p5616_p2 = pmov %p5614_p0 }
 0x149   : > { %4491 = dma.done.wait (%p5615_p1), [#allocation20], 1040  }
 0x14a   : > { %4493 = vsyncadd (%p5616_p2), [#allocation20], 4294966256  ;;  %s3366_s27 = sshll.u32 %s4640_s26, 7  ;;  %vm762_vm0 = vcmask 516096   ;;  %s5617_s3 = sld [smem:[#allocation32_spill]]  ;;  %vm804_vm1 = vcmask 523264   ;;  %v852_v51 = vlaneseq }
 0x14b   : > { %s759_s28 = sld [smem:[#allocation4 + %s3366_s27]]  ;;  %s764_s2 = sadd.s32 1, %s3366_s27  ;;  %v835_v17 = vld [vmem:[%s5556_s6 + $0x8] sm:$0xff]  ;;  %v837_v18 = vld [vmem:[%s5556_s6 + $0x18] sm:$0xff]  ;;  %v834_v20 = vld [vmem:[%s5556_s6] sm:$0xff]  ;;  %v4516_v30 = vmov 0.0  }
 0x14c   : > { %s765_s1 = sld [smem:[#allocation4 + %s764_s2]]  ;;  %s769_s14 = sadd.s32 2, %s3366_s27  ;;  %v3822_v19 = vpack.c.bf16 %v837_v18, %v835_v17  ;;  %v836_v21 = vld [vmem:[%s5556_s6 + $0x10] sm:$0xff]  ;;  %v839_v23 = vld [vmem:[%s5556_s6 + $0x28] sm:$0xff]  ;;  %v841_v24 = vld [vmem:[%s5556_s6 + $0x38] sm:$0xff]  ;;  %929 = vmatprep.mubr.f32.mxu0 %v4516_v30  ;;  %3577 = vmatprep.subr.mxu1 %v4516_v30  ;;  %v5053_v52 = vshrl.u32 %v852_v51, 7 }
 0x14d   : > { %s770_s0 = sld [smem:[#allocation4 + %s769_s14]]  ;;  %s774_s22 = sadd.s32 3, %s3366_s27  ;;  %v3824_v22 = vpack.c.bf16 %v836_v21, %v834_v20  ;;  %v838_v25 = vld [vmem:[%s5556_s6 + $0x20] sm:$0xff]  ;;  %v3826_v26 = vpack.c.bf16 %v841_v24, %v839_v23  ;;  %v840_v27 = vld [vmem:[%s5556_s6 + $0x30] sm:$0xff]  ;;  %v843_v28 = vld [vmem:[%s5556_s6 + $0x48] sm:$0xff]  ;;  %vm4517_vm2 = vmmov 0  }
 0x14e   : > { %s775_s4 = sld [smem:[#allocation4 + %s774_s22]]  ;;  %s779_s21 = sadd.s32 4, %s3366_s27  ;;  %3823 = vmatprep.subr.bf16.mxu0 %v3822_v19  ;;  %v845_v29 = vld [vmem:[%s5556_s6 + $0x58] sm:$0xff]  ;;  %v3828_v31 = vpack.c.bf16 %v840_v27, %v838_v25  ;;  %v842_v33 = vld [vmem:[%s5556_s6 + $0x40] sm:$0xff]  ;;  %v844_v34 = vld [vmem:[%s5556_s6 + $0x50] sm:$0xff]  ;;  %3579 = vmatprep.mubr.msk.f32.mxu1 %vm4517_vm2, %v4516_v30  ;;  %v854_v53 = vsub.s32 0, %v5053_v52 }
 0x14f   : > { %s780_s29 = sld [smem:[#allocation4 + %s779_s21]]  ;;  %s784_s24 = sadd.s32 5, %s3366_s27  ;;  %3825 = vmatpush1.bf16.msra.mxu0 %v3824_v22  ;;  %v3830_v32 = vpack.c.bf16 %v845_v29, %v843_v28  ;;  %v847_v35 = vld [vmem:[%s5556_s6 + $0x68] sm:$0xff]  ;;  %v849_v36 = vld [vmem:[%s5556_s6 + $0x78] sm:$0xff]  ;;  %v3832_v37 = vpack.c.bf16 %v844_v34, %v842_v33  ;;  %v846_v39 = vld [vmem:[%s5556_s6 + $0x60] sm:$0xff]  ;;  %v858_v59 = vsub.s32 1, %v5053_v52 }
 0x150   : > { %s785_s20 = sld [smem:[#allocation4 + %s784_s24]]  ;;  %s789_s30 = sadd.s32 6, %s3366_s27  ;;  %3827 = vmatprep.subr.bf16.mxu0 %v3826_v26  ;;  %v3834_v38 = vpack.c.bf16 %v849_v36, %v847_v35  ;;  %v848_v40 = vld [vmem:[%s5556_s6 + $0x70] sm:$0xff]  ;;  %v3368_v48 = vld [vmem:[#allocation5] ss:$0 sm:$0xff]  ;;  %vm946_vm3 = vcmask 130048  }
 0x151   : > { %s760_s12 = scalar_lea.vmem %s5617_s3, %s759_s28  ;;  %s790_s5 = sld [smem:[#allocation4 + %s789_s30]]  ;;  %v3836_v41 = vpack.c.bf16 %v848_v40, %v846_v39  ;;  %v850_v54 = vld [vmem:[#allocation7] sm:$0x3]  ;;  %vm1022_vm4 = vcmask 64512   ;;  %vm1616_vm5 = vcmask 261120   ;;  %vm1618_vm6 = vcmask 392192  }
 0x152   : > { %v761_v0 = vld [vmem:[%s760_s12] sm:$0x1]  ;;  %s766_s2 = scalar_lea.vmem %s5617_s3, %s765_s1  ;;  %s794_s10 = sadd.s32 7, %s3366_s27  ;;  %v855_v55 = vrot.slane %v850_v54, %v854_v53  ;;  %v859_v60 = vrot.slane %v850_v54, %v858_v59 }
 0x153   : > { %763 = vst.msk [vmem:[#allocation2] sm:$0x1] %vm762_vm0, %v761_v0  ;;  %v767_v1 = vld [vmem:[%s766_s2] sm:$0x1]  ;;  %s771_s21 = scalar_lea.vmem %s5617_s3, %s770_s0  ;;  %s795_s24 = sld [smem:[#allocation4 + %s794_s10]]  ;;  %3829 = vmatpush1.bf16.msra.mxu0 %v3828_v31 }
 0x154   : > { %768 = vst.msk [vmem:[#allocation2 + $0x1] sm:$0x1] %vm762_vm0, %v767_v1  ;;  %v772_v2 = vld [vmem:[%s771_s21] sm:$0x1]  ;;  %s776_s30 = scalar_lea.vmem %s5617_s3, %s775_s4  ;;  %s5618_s21 = sld [smem:[#allocation33_spill]]  ;;  %3831 = vmatprep.subr.bf16.mxu0 %v3830_v32 }
 0x155   : > { %773 = vst.msk [vmem:[#allocation2 + $0x2] sm:$0x1] %vm762_vm0, %v772_v2  ;;  %v777_v3 = vld [vmem:[%s776_s30] sm:$0x1]  ;;  %s781_s27 = scalar_lea.vmem %s5617_s3, %s780_s29  ;;  %s5619_s29 = sld [smem:[#allocation34_spill]] }
 0x156   : > { %778 = vst.msk [vmem:[#allocation2 + $0x3] sm:$0x1] %vm762_vm0, %v777_v3  ;;  %v782_v4 = vld [vmem:[%s781_s27] sm:$0x1]  ;;  %s786_s10 = scalar_lea.vmem %s5617_s3, %s785_s20  ;;  %s4518_s2 = smov 48  }
 0x157   : > { %783 = vst.msk [vmem:[#allocation2 + $0x4] sm:$0x1] %vm762_vm0, %v782_v4  ;;  %v787_v5 = vld [vmem:[%s786_s10] sm:$0x1]  ;;  %s791_s4 = scalar_lea.vmem %s5617_s3, %s790_s5  ;;  %3833 = vmatpush1.bf16.msra.mxu0 %v3832_v37  ;;  %p751_p3 = scmp.lt.s32.totalorder %s4640_s26, 1 }
 0x158   : > { %788 = vst.msk [vmem:[#allocation2 + $0x5] sm:$0x1] %vm762_vm0, %v787_v5  ;;  %v792_v6 = vld [vmem:[%s791_s4] sm:$0x1]  ;;  %3835 = vmatprep.subr.bf16.mxu0 %v3834_v38  ;;  %s4521_s23 = smov 32   ;;  %s4522_s28 = smov 96  }
 0x159   : > { %793 = vst.msk [vmem:[#allocation2 + $0x6] sm:$0x1] %vm762_vm0, %v792_v6  ;;  %s796_s14 = scalar_lea.vmem %s5617_s3, %s795_s24  ;;  %s5627_s26 = smov (!%p751_p3, %s4640_s26), 1 }
 0x15a   : > { %v797_v7 = vld [vmem:[%s796_s14] sm:$0x1]  ;;  %s4519_s14 = smov 64   ;;  %s4520_s24 = smov 112  }
 0x15b   : > { %798 = vst.msk [vmem:[#allocation2 + $0x7] sm:$0x1] %vm762_vm0, %v797_v7  ;;  %v800_v8 = vld [vmem:[%s5618_s21] sm:$0xff]  ;;  %3837 = vmatpush1.bf16.msra.mxu0 %v3836_v41  ;;  %s5620_s21 = sld [smem:[#allocation31_spill]]  ;;  %s4523_s30 = smov 16  }
 0x15c   : > { %v3367_v46 = vld [vmem:[%s5619_s29] ss:$0 sm:$0xff]  ;;  %s4524_s7 = smov 80   ;;  %s5621_s25 = sld [smem:[#allocation39_spill]] }
 0x15d   : > { %s3365_s27 = sshll.u32 %s5627_s26, 3  ;;  %s5624_s10 = sld [smem:[#allocation41_spill]] }
 0x161   : > { %s753_s5 = scalar_lea.vmem %s5620_s21, %s5627_s26  ;;  %s5623_s21 = sld [smem:[#allocation40_spill]] }
 0x162   : > { %v799_v9 = vld [vmem:[#allocation2] sm:$0xff]  ;;  %s5622_s12 = smov %s5621_s25 }
 0x163   : > { %v801_v10 = vadd.f32 %v800_v8, %v799_v9  ;;  %v5092_v0 = vld [vmem:[%s753_s5] ss:$0 sm:$0xff] }
 0x165   : > { %v805_v11 = vsel %vm804_vm1, %v801_v10, 0.0 }
 0x166   : > { %806 = vadd.xlane.f32.xlu0 %v805_v11 }
 0x1f3   : > { %v807_v12 = vpop.xlane.xlu0 %806 }
 0x1f4   : > { %v809_v13 = vmul.f32 0.015625, %v807_v12 }
 0x1f6   : > { %v810_v14 = vsub.f32 %v801_v10, %v809_v13 }
 0x1f8   : > { %v811_v15 = vmul.f32 %v810_v14, %v810_v14 }
 0x1fa   : > { %v812_v16 = vsel %vm804_vm1, %v811_v15, 0.0 }
 0x1fb   : > { %813 = vadd.xlane.f32.xlu0 %v812_v16 }
 0x288   : > { %v814_v42 = vpop.xlane.xlu0 %813 }
 0x289   : > { %v815_v43 = vmul.f32 0.015625, %v814_v42 }
 0x28b   : > { %v816_v44 = vadd.f32 1e-12, %v815_v43 }
 0x28d   : > { %4098 = vrsqrt.f32 %v816_v44 }
 0x297   : > { %v4099_v45 = vpop.eup %4098 }
 0x298   : > { %v818_v47 = vmul.f32 %v4099_v45, %v810_v14 }
 0x29a   : > { %v825_v49 = vmul.f32 %v3367_v46, %v818_v47 }
 0x29c   : > { %v5049_v50 = vadd.f32 %v3368_v48, %v825_v49 }
 0x29e   : > { %3369 = vmatmul.mubr.msk.f32.vlgmr.msra.gmra.mrb[0].mxu0 %vm804_vm1, %v5049_v50 }
 0x29f   : > { %3633 = vmatprep.mubr.msk.f32.mxu0 %vm4517_vm2, %v4516_v30 }
 0x371   : > { %v931_v56 = vpop.f32.mrb[0].mxu0 }
 0x372   : > { %v5062_v57 = vadd.f32 %v931_v56, %v855_v55  ;;  %v933_v58 = vpop.f32.mrb[1].mxu0 }
 0x373   : > { %v5076_v63 = vadd.f32 %v933_v58, %v859_v60 }
 0x374   : > { %1109 = vrot.lane.b32.xlu0 %v5062_v57, %s4518_s2  ;;  %944 = vrot.lane.b32.xlu1 %v5062_v57, %s4519_s14  ;;  %v5073_v62 = vmul.f32 0.25, %v5062_v57 }
 0x3e6   : > { %v945_v61 = vpop.permute.xlu1 %944  ;;  %v1110_v10 = vpop.permute.xlu0 %1109 }
 0x3e7   : > { %3578 = vmatpush3.xpose.msk.msra.mxu1 %vm946_vm3, %v945_v61 }
 0x3e8   : > { %3582 = vmatprep.subr.mxu1 %v4516_v30 }
 0x3ea   : > { %3580 = vmatmul.mubr.msk.f32.vlgmr.msra.gmra.mrb[0].mxu1 %vm946_vm3, %v5073_v62 }
 0x3eb   : > { %3583 = vmatpush3.msra.mxu1 %v5076_v63  ;;  %3584 = vmatprep.mubr.msk.f32.mxu1 %vm4517_vm2, %v4516_v30 }
 0x3ec   : > { %3587 = vmatprep.subr.mxu1 %v4516_v30 }
 0x4bd   : > { %v1018_v1 = vpop.f32.mrb[0].mxu1 }
 0x4be   : > { %v1019_v2 = vadd.f32 %v5092_v0, %v1018_v1  ;;  %v3581_v3 = vpop.f32.mrb[1].mxu1 }
 0x4c0   : > { %v1023_v4 = vsel %vm1022_vm4, %v1019_v2, -inf }
 0x4c1   : > { %1024 = vmax.xlane.f32.xlu1 %v1023_v4 }
 0x4d2   : > { %1197 = vrot.lane.b32.xlu1 %v5076_v63, %s4520_s24 }
 0x4d6   : > { %1275 = vrot.lane.b32.xlu1 %v5062_v57, %s4521_s23 }
 0x54e   : > { %v1025_v5 = vpop.xlane.xlu1 %1024 }
 0x54f   : > { %v1026_v6 = vsub.f32 %v1019_v2, %v1025_v5 }
 0x551   : > { %v1027_v7 = vmul.f32 1.442695, %v1026_v6 }
 0x552   : > { %v1198_v15 = vpop.permute.xlu1 %1197 }
 0x553   : > { %4100 = vpow2.f32 %v1027_v7  ;;  %v1620_v7 = vld [vmem:[%s5558_s8] sm:$0xff] }
 0x556   : > { %v1276_v27 = vpop.permute.xlu1 %1275 }
 0x55d   : > { %v4101_v8 = vpop.eup %4100 }
 0x55e   : > { %v1029_v9 = vsel %vm1022_vm4, %v4101_v8, 0.0 }
 0x55f   : > { %1030 = vadd.xlane.f32.xlu0 %v1029_v9  ;;  %v4525_v9 = vmov 0.0|0.0  }
 0x560   : > { %3838 = vmatprep.subr.bf16.mxu0 %v4525_v9 }
 0x575   : > { %1107 = vrot.lane.b32.xlu0 %v5073_v62, %s4520_s24 }
 0x5ec   : > { %v1031_v11 = vpop.xlane.xlu0 %1030 }
 0x5ed   : > { %4102 = vrcp.f32 %v1031_v11  ;;  %v1623_v11 = vld [vmem:[%s5558_s8 + $0x18] sm:$0xff] }
 0x5f0   : > { %v1108_v14 = vpop.permute.xlu0 %1107 }
 0x5f7   : > { %v4103_v12 = vpop.eup %4102 }
 0x5f8   : > { %v1033_v13 = vmul.f32 %v4103_v12, %v4101_v8  ;;  %v1622_v8 = vld [vmem:[%s5558_s8 + $0x10] sm:$0xff] }
 0x5f9   : > { %v3842_v12 = vpack.c.bf16 %v1623_v11, %v1622_v8  ;;  %v1842_v11 = vld [vmem:[%s5623_s21 + $0x38] sm:$0xff] }
 0x5fa   : > { %3585 = vmatmul.mubr.msk.f32.vlgmr.msra.gmra.mrb[2].mxu1 %vm1022_vm4, %v1033_v13  ;;  %v1624_v13 = vld [vmem:[%s5558_s8 + $0x20] sm:$0xff] }
 0x5fb   : > { %3588 = vmatpush3.xpose.msk.msra.mxu1 %vm946_vm3, %v1110_v10  ;;  %3589 = vmatprep.mubr.msk.f32.mxu1 %vm4517_vm2, %v4516_v30 }
 0x5fc   : > { %3592 = vmatprep.subr.mxu1 %v4516_v30 }
 0x5fe   : > { %3590 = vmatmul.mubr.msk.f32.vlgmr.msra.gmra.mrb[4].mxu1 %vm946_vm3, %v1108_v14  ;;  %v1625_v14 = vld [vmem:[%s5558_s8 + $0x28] sm:$0xff] }
 0x5ff   : > { %3593 = vmatpush3.msra.mxu1 %v1198_v15  ;;  %3594 = vmatprep.mubr.msk.f32.mxu1 %vm4517_vm2, %v4516_v30  ;;  %v3845_v15 = vpack.c.bf16 %v1625_v14, %v1624_v13  ;;  %v1843_v13 = vld [vmem:[%s5623_s21 + $0x40] sm:$0xff]  ;;  %v1844_v14 = vld [vmem:[%s5623_s21 + $0x48] sm:$0xff] }
 0x600   : > { %3597 = vmatprep.subr.mxu1 %v4516_v30 }
 0x6cd   : > { %v5112_v16 = vpop.f32.mrb[2].mxu1 }
 0x6ce   : > { %v3586_v17 = vpop.f32.mrb[3].mxu1 }
 0x6cf   : > { %v1626_v17 = vld [vmem:[%s5558_s8 + $0x30] sm:$0xff] }
 0x6d1   : > { %v1181_v18 = vpop.f32.mrb[4].mxu1 }
 0x6d2   : > { %v1182_v19 = vadd.f32 %v5092_v0, %v1181_v18  ;;  %v3591_v20 = vpop.f32.mrb[5].mxu1  ;;  %v1627_v18 = vld [vmem:[%s5558_s8 + $0x38] sm:$0xff] }
 0x6d4   : > { %v1185_v21 = vsel %vm1022_vm4, %v1182_v19, -inf }
 0x6d5   : > { %1186 = vmax.xlane.f32.xlu0 %v1185_v21 }
 0x762   : > { %v1187_v22 = vpop.xlane.xlu0 %1186 }
 0x763   : > { %v1188_v23 = vsub.f32 %v1182_v19, %v1187_v22  ;;  %v3848_v19 = vpack.c.bf16 %v1627_v18, %v1626_v17  ;;  %v1845_v17 = vld [vmem:[%s5623_s21 + $0x50] sm:$0xff]  ;;  %v1846_v18 = vld [vmem:[%s5623_s21 + $0x58] sm:$0xff] }
 0x765   : > { %v1189_v24 = vmul.f32 1.442695, %v1188_v23 }
 0x767   : > { %4104 = vpow2.f32 %v1189_v24 }
 0x771   : > { %v4105_v25 = vpop.eup %4104 }
 0x772   : > { %v1191_v26 = vsel %vm1022_vm4, %v4105_v25, 0.0 }
 0x773   : > { %1192 = vadd.xlane.f32.xlu1 %v1191_v26 }
 0x784   : > { %1273 = vrot.lane.b32.xlu1 %v5073_v62, %s4522_s28 }
 0x800   : > { %v1193_v28 = vpop.xlane.xlu1 %1192 }
 0x801   : > { %4106 = vrcp.f32 %v1193_v28  ;;  %v3383_v28 = vld [vmem:[#allocation9] ss:$0 sm:$0xff] }
 0x804   : > { %v1274_v32 = vpop.permute.xlu1 %1273 }
 0x80b   : > { %v4107_v29 = vpop.eup %4106 }
 0x80c   : > { %v1195_v31 = vmul.f32 %v4107_v29, %v4105_v25 }
 0x80e   : > { %3595 = vmatmul.mubr.msk.f32.vlgmr.msra.gmra.mrb[6].mxu1 %vm1022_vm4, %v1195_v31 }
 0x80f   : > { %3598 = vmatpush3.xpose.msk.msra.mxu1 %vm946_vm3, %v1276_v27  ;;  %3599 = vmatprep.mubr.msk.f32.mxu1 %vm4517_vm2, %v4516_v30 }
 0x810   : > { %3602 = vmatprep.subr.mxu1 %v4516_v30 }
 0x812   : > { %3600 = vmatmul.mubr.msk.f32.vlgmr.msra.gmra.mrb[8].mxu1 %vm946_vm3, %v1274_v32 }
 0x813   : > { %3604 = vmatprep.mubr.msk.f32.mxu1 %vm4517_vm2, %v4516_v30 }
 0x8e1   : > { %v1269_v33 = vpop.f32.mrb[6].mxu1 }
 0x8e2   : > { %v3596_v34 = vpop.f32.mrb[7].mxu1 }
 0x8e5   : > { %v1347_v35 = vpop.f32.mrb[8].mxu1 }
 0x8e6   : > { %v1348_v36 = vadd.f32 %v5092_v0, %v1347_v35  ;;  %v3601_v37 = vpop.f32.mrb[9].mxu1 }
 0x8e8   : > { %v1351_v38 = vsel %vm1022_vm4, %v1348_v36, -inf }
 0x8e9   : > { %1352 = vmax.xlane.f32.xlu0 %v1351_v38 }
 0x8ff   : > { %1362 = vrot.lane.b32.xlu0 %v5076_v63, %s4522_s28 }
 0x903   : > { %1440 = vrot.lane.b32.xlu0 %v5062_v57, %s4523_s30 }
 0x907   : > { %1438 = vrot.lane.b32.xlu0 %v5073_v62, %s4524_s7 }
 0x976   : > { %v1353_v39 = vpop.xlane.xlu0 %1352 }
 0x977   : > { %v1354_v40 = vsub.f32 %v1348_v36, %v1353_v39  ;;  %v1738_v39 = vld [vmem:[%s5621_s25] sm:$0xff]  ;;  %s757_s25 = scalar_lea.vmem %s5624_s10, %s3365_s27 }
 0x979   : > { %v1355_v41 = vmul.f32 1.442695, %v1354_v40  ;;  %v1739_v40 = vld [vmem:[%s5622_s12 + $0x8] sm:$0xff] }
 0x97a   : > { %v1363_v42 = vpop.permute.xlu0 %1362 }
 0x97b   : > { %4108 = vpow2.f32 %v1355_v41  ;;  %3603 = vmatpush3.msra.mxu1 %v1363_v42  ;;  %v3851_v41 = vpack.c.bf16 %v1739_v40, %v1738_v39  ;;  %v1741_v42 = vld [vmem:[%s5622_s12 + $0x18] sm:$0xff]  ;;  %v3389_v39 = vld [vmem:[#allocation15] ss:$0 sm:$0xff] }
 0x97c   : > { %3607 = vmatprep.subr.mxu1 %v4516_v30 }
 0x97e   : > { %v1441_v47 = vpop.permute.xlu0 %1440 }
 0x982   : > { %v1439_v49 = vpop.permute.xlu0 %1438 }
 0x985   : > { %v4109_v43 = vpop.eup %4108 }
 0x986   : > { %v1357_v44 = vsel %vm1022_vm4, %v4109_v43, 0.0 }
 0x987   : > { %1358 = vadd.xlane.f32.xlu1 %v1357_v44  ;;  %v1742_v44 = vld [vmem:[%s5622_s12 + $0x20] sm:$0xff] }
 0xa14   : > { %v1359_v45 = vpop.xlane.xlu1 %1358 }
 0xa15   : > { %4110 = vrcp.f32 %v1359_v45  ;;  %v1743_v45 = vld [vmem:[%s5622_s12 + $0x28] sm:$0xff] }
 0xa1f   : > { %v4111_v46 = vpop.eup %4110 }
 0xa20   : > { %v1361_v48 = vmul.f32 %v4111_v46, %v4109_v43  ;;  %v3857_v46 = vpack.c.bf16 %v1743_v45, %v1742_v44 }
 0xa22   : > { %3605 = vmatmul.mubr.msk.f32.vlgmr.msra.gmra.mrb[10].mxu1 %vm1022_vm4, %v1361_v48  ;;  %v1745_v48 = vld [vmem:[%s5622_s12 + $0x38] sm:$0xff] }
 0xa23   : > { %3608 = vmatpush3.xpose.msk.msra.mxu1 %vm946_vm3, %v1441_v47  ;;  %3609 = vmatprep.mubr.msk.f32.mxu1 %vm4517_vm2, %v4516_v30  ;;  %v1744_v47 = vld [vmem:[%s5622_s12 + $0x30] sm:$0xff] }
 0xa24   : > { %3612 = vmatprep.subr.mxu1 %v4516_v30 }
 0xa26   : > { %3610 = vmatmul.mubr.msk.f32.vlgmr.msra.gmra.mrb[12].mxu1 %vm946_vm3, %v1439_v49  ;;  %v3860_v49 = vpack.c.bf16 %v1745_v48, %v1744_v47 }
 0xa27   : > { %3614 = vmatprep.mubr.msk.f32.mxu1 %vm4517_vm2, %v4516_v30 }
 0xaf5   : > { %v1434_v51 = vpop.f32.mrb[10].mxu1 }
 0xaf6   : > { %v3606_v54 = vpop.f32.mrb[11].mxu1 }
 0xaf7   : > { %v1836_v54 = vld [vmem:[%s5623_s21 + $0x8] sm:$0xff] }
 0xaf9   : > { %v1512_v55 = vpop.f32.mrb[12].mxu1 }
 0xafa   : > { %v1513_v56 = vadd.f32 %v5092_v0, %v1512_v55  ;;  %v3611_v57 = vpop.f32.mrb[13].mxu1 }
 0xafc   : > { %v1516_v58 = vsel %vm1022_vm4, %v1513_v56, -inf }
 0xafd   : > { %1517 = vmax.xlane.f32.xlu0 %v1516_v58 }
 0xb8a   : > { %v1518_v60 = vpop.xlane.xlu0 %1517 }
 0xb8b   : > { %v1519_v61 = vsub.f32 %v1513_v56, %v1518_v60 }
 0xb8d   : > { %v1520_v62 = vmul.f32 1.442695, %v1519_v61  ;;  %v3385_v61 = vld [vmem:[#allocation10] ss:$0 sm:$0xff] }
 0xb8f   : > { %4112 = vpow2.f32 %v1520_v62 }
 0xb99   : > { %v4113_v1 = vpop.eup %4112 }
 0xb9a   : > { %v1522_v2 = vsel %vm1022_vm4, %v4113_v1, 0.0 }
 0xb9b   : > { %1523 = vadd.xlane.f32.xlu1 %v1522_v2 }
 0xbac   : > { %1527 = vrot.lane.b32.xlu1 %v5076_v63, %s4524_s7  ;;  %v1621_v63 = vld [vmem:[%s5558_s8 + $0x8] sm:$0xff] }
 0xbad   : > { %v3839_v10 = vpack.c.bf16 %v1621_v63, %v1620_v7  ;;  %v1839_v7 = vld [vmem:[%s5623_s21 + $0x20] sm:$0xff]  ;;  %v1840_v63 = vld [vmem:[%s5623_s21 + $0x28] sm:$0xff] }
 0xbae   : > { %v3869_v8 = vpack.c.bf16 %v1840_v63, %v1839_v7  ;;  %v3402_v7 = vld [vmem:[%s5556_s6 + $0xd0] sm:$0xff] }
 0xbaf   : > { %3840 = vmatpush3.bf16.msra.mxu0 %v3839_v10  ;;  %v1841_v10 = vld [vmem:[%s5623_s21 + $0x30] sm:$0xff] }
 0xbb0   : > { %1604 = vrot.lane.b32.xlu1 %v1269_v33, %s4523_s30  ;;  %3841 = vmatprep.subr.bf16.mxu0 %v4525_v9 }
 0xbb3   : > { %3843 = vmatpush3.bf16.msra.mxu0 %v3842_v12  ;;  %v3872_v12 = vpack.c.bf16 %v1842_v11, %v1841_v10  ;;  %v3407_v10 = vld [vmem:[%s5556_s6 + $0xf8] sm:$0xff]  ;;  %v3404_v11 = vld [vmem:[%s5556_s6 + $0xe0] sm:$0xff] }
 0xbb4   : > { %1608 = vrot.lane.b32.xlu1 %v1434_v51, %s4521_s23  ;;  %3844 = vmatprep.subr.bf16.mxu0 %v4525_v9  ;;  %v1835_v51 = vld [vmem:[%s5623_s21] sm:$0xff] }
 0xbb5   : > { %v3863_v55 = vpack.c.bf16 %v1836_v54, %v1835_v51  ;;  %v3395_v51 = vld [vmem:[%s5556_s6 + $0x98] sm:$0xff] }
 0xbb7   : > { %3846 = vmatpush3.bf16.msra.mxu0 %v3845_v15  ;;  %v3875_v15 = vpack.c.bf16 %v1844_v14, %v1843_v13  ;;  %v3406_v13 = vld [vmem:[%s5556_s6 + $0xf0] sm:$0xff] }
 0xbb8   : > { %3847 = vmatprep.subr.bf16.mxu0 %v4525_v9  ;;  %v3900_v14 = vpack.c.bf16 %v3406_v13, %v3404_v11 }
 0xbbb   : > { %3849 = vmatpush3.bf16.msra.mxu0 %v3848_v19  ;;  %v3878_v19 = vpack.c.bf16 %v1846_v18, %v1845_v17 }
 0xbbc   : > { %3862 = vmatprep.subr.bf16.mxu0 %v4525_v9 }
 0xc28   : > { %v1524_v3 = vpop.xlane.xlu1 %1523 }
 0xc29   : > { %4114 = vrcp.f32 %v1524_v3 }
 0xc2c   : > { %v1528_v4 = vpop.permute.xlu1 %1527 }
 0xc2d   : > { %3613 = vmatpush3.msra.mxu1 %v1528_v4  ;;  %v1837_v4 = vld [vmem:[%s5623_s21 + $0x10] sm:$0xff] }
 0xc2e   : > { %3850 = vmatprep.subr.bf16.mxu1 %v4525_v9 }
 0xc30   : > { %v1605_v22 = vpop.permute.xlu1 %1604 }
 0xc31   : > { %v1615_v24 = vsel %vm946_vm3, %v5112_v16, %v1605_v22 }
 0xc33   : > { %v4115_v5 = vpop.eup %4114 }
 0xc34   : > { %v1526_v6 = vmul.f32 %v4115_v5, %v4113_v1  ;;  %v1609_v23 = vpop.permute.xlu1 %1608  ;;  %v3386_v1 = vld [vmem:[#allocation12] ss:$0 sm:$0xff]  ;;  %v1838_v5 = vld [vmem:[%s5623_s21 + $0x18] sm:$0xff] }
 0xc35   : > { %v1617_v25 = vsel %vm1616_vm5, %v1615_v24, %v1609_v23  ;;  %v1849_v23 = vld [vmem:[%s5623_s21 + $0x70] sm:$0xff]  ;;  %v1850_v24 = vld [vmem:[%s5623_s21 + $0x78] sm:$0xff] }
 0xc36   : > { %3615 = vmatmul.mubr.msk.f32.vlgmr.msra.gmra.mrb[14].mxu1 %vm1022_vm4, %v1526_v6  ;;  %v3866_v6 = vpack.c.bf16 %v1838_v5, %v1837_v4  ;;  %v3403_v4 = vld [vmem:[%s5556_s6 + $0xd8] sm:$0xff] }
 0xc37   : > { %3652 = vmatprep.mubr.msk.f32.mxu1 %vm4517_vm2, %v4516_v30  ;;  %3852 = vmatpush3.bf16.msra.mxu1 %v3851_v41 }
 0xc38   : > { %3853 = vmatprep.subr.bf16.mxu1 %v4525_v9 }
 0xd09   : > { %v1599_v20 = vpop.f32.mrb[14].mxu1 }
 0xd0a   : > { %1612 = vrot.lane.b32.xlu0 %v1599_v20, %s4518_s2  ;;  %v3616_v21 = vpop.f32.mrb[15].mxu1  ;;  %v1847_v20 = vld [vmem:[%s5623_s21 + $0x60] sm:$0xff] }
 0xd0b   : > { %v1848_v21 = vld [vmem:[%s5623_s21 + $0x68] sm:$0xff] }
 0xd0c   : > { %v3881_v22 = vpack.c.bf16 %v1848_v21, %v1847_v20  ;;  %v3390_v20 = vld [vmem:[#allocation16] ss:$0 sm:$0xff] }
 0xd7c   : > { %v1613_v26 = vpop.permute.xlu0 %1612 }
 0xd7d   : > { %v1619_v27 = vsel %vm1618_vm6, %v1617_v25, %v1613_v26  ;;  %v3884_v25 = vpack.c.bf16 %v1850_v24, %v1849_v23  ;;  %v3387_v26 = vld [vmem:[#allocation13] ss:$0 sm:$0xff] }
 0xd7e   : > { %3634 = vmatmul.mubr.msk.f32.vlgmr.msra.gmra.mrb[2].mxu0 %vm804_vm1, %v1619_v27 }
 0xd7f   : > { %3687 = vmatprep.mubr.msk.f32.mxu0 %vm4517_vm2, %v4516_v30  ;;  %3864 = vmatpush3.bf16.msra.mxu0 %v3863_v55  ;;  %v3392_v55 = vld [vmem:[%s5556_s6 + $0x80] sm:$0xff] }
 0xd80   : > { %3865 = vmatprep.subr.bf16.mxu0 %v4525_v9 }
 0xd83   : > { %3867 = vmatpush3.bf16.msra.mxu0 %v3866_v6  ;;  %v3400_v6 = vld [vmem:[%s5556_s6 + $0xc0] sm:$0xff] }
 0xd84   : > { %3868 = vmatprep.subr.bf16.mxu0 %v4525_v9  ;;  %v3896_v63 = vpack.c.bf16 %v3402_v7, %v3400_v6 }
 0xd87   : > { %3870 = vmatpush3.bf16.msra.mxu0 %v3869_v8  ;;  %v3405_v8 = vld [vmem:[%s5556_s6 + $0xe8] sm:$0xff] }
 0xd88   : > { %3871 = vmatprep.subr.bf16.mxu0 %v4525_v9 }
 0xd8b   : > { %3873 = vmatpush3.bf16.msra.mxu0 %v3872_v12  ;;  %v3898_v12 = vpack.c.bf16 %v3407_v10, %v3405_v8 }
 0xd8c   : > { %3874 = vmatprep.subr.bf16.mxu0 %v4525_v9 }
 0xd8f   : > { %3876 = vmatpush3.bf16.msra.mxu0 %v3875_v15 }
 0xd90   : > { %3877 = vmatprep.subr.bf16.mxu0 %v4525_v9 }
 0xd93   : > { %3879 = vmatpush3.bf16.msra.mxu0 %v3878_v19 }
 0xd94   : > { %3880 = vmatprep.subr.bf16.mxu0 %v4525_v9 }
 0xd97   : > { %3882 = vmatpush3.bf16.msra.mxu0 %v3881_v22  ;;  %v3391_v22 = vld [vmem:[#allocation18] ss:$0 sm:$0xff] }
 0xd98   : > { %3883 = vmatprep.subr.bf16.mxu0 %v4525_v9 }
 0xd9b   : > { %3885 = vmatpush3.bf16.msra.mxu0 %v3884_v25  ;;  %v1976_v25 = vld [vmem:[#allocation7 + $0x2] sm:$0x3] }
 0xd9c   : > { %3710 = vmatprep.subr.mxu0 %v4516_v30 }
 0xe51   : > { %v1704_v29 = vpop.f32.mrb[2].mxu0 }
 0xe52   : > { %v1705_v31 = vadd.f32 %v3383_v28, %v1704_v29  ;;  %v3635_v32 = vpop.f32.mrb[3].mxu0 }
 0xe54   : > { %v1708_v33 = vadd.f32 %v1705_v31, %v5049_v50  ;;  %v1740_v50 = vld [vmem:[%s5622_s12 + $0x10] sm:$0xff] }
 0xe55   : > { %v3854_v43 = vpack.c.bf16 %v1741_v42, %v1740_v50 }
 0xe56   : > { %v1711_v34 = vsel %vm804_vm1, %v1708_v33, 0.0 }
 0xe57   : > { %1712 = vadd.xlane.f32.xlu1 %v1711_v34  ;;  %3855 = vmatpush3.bf16.msra.mxu1 %v3854_v43 }
 0xe58   : > { %3856 = vmatprep.subr.bf16.mxu1 %v4525_v9 }
 0xe5b   : > { %3858 = vmatpush3.bf16.msra.mxu1 %v3857_v46 }
 0xe5c   : > { %3859 = vmatprep.subr.bf16.mxu1 %v4525_v9 }
 0xe5f   : > { %3861 = vmatpush3.bf16.msra.mxu1 %v3860_v49  ;;  %v3393_v49 = vld [vmem:[%s5556_s6 + $0x88] sm:$0xff] }
 0xe60   : > { %v3886_v54 = vpack.c.bf16 %v3395_v51, %v3393_v49 }
 0xe62   : > { %3887 = vmatprep.subr.bf16.mxu1 %v3886_v54 }
 0xee4   : > { %v1713_v16 = vpop.xlane.xlu1 %1712 }
 0xee5   : > { %v1714_v35 = vmul.f32 0.015625, %v1713_v16 }
 0xee7   : > { %v1715_v36 = vsub.f32 %v1708_v33, %v1714_v35 }
 0xee9   : > { %v1716_v37 = vmul.f32 %v1715_v36, %v1715_v36 }
 0xeeb   : > { %v1717_v38 = vsel %vm804_vm1, %v1716_v37, 0.0 }
 0xeec   : > { %1718 = vadd.xlane.f32.xlu0 %v1717_v38 }
 0xf79   : > { %v1719_v56 = vpop.xlane.xlu0 %1718 }
 0xf7a   : > { %v1720_v57 = vmul.f32 0.015625, %v1719_v56  ;;  %v3394_v56 = vld [vmem:[%s5556_s6 + $0x90] sm:$0xff] }
 0xf7c   : > { %v1721_v58 = vadd.f32 1e-12, %v1720_v57  ;;  %v3888_v57 = vpack.c.bf16 %v3394_v56, %v3392_v55 }
 0xf7e   : > { %4116 = vrsqrt.f32 %v1721_v58  ;;  %v3397_v58 = vld [vmem:[%s5556_s6 + $0xa8] sm:$0xff] }
 0xf88   : > { %v4117_v60 = vpop.eup %4116 }
 0xf89   : > { %v1723_v62 = vmul.f32 %v4117_v60, %v1715_v36  ;;  %v3399_v60 = vld [vmem:[%s5556_s6 + $0xb8] sm:$0xff] }
 0xf8b   : > { %v1730_v2 = vmul.f32 %v3385_v61, %v1723_v62  ;;  %v3890_v61 = vpack.c.bf16 %v3399_v60, %v3397_v58  ;;  %v3396_v62 = vld [vmem:[%s5556_s6 + $0xa0] sm:$0xff] }
 0xf8d   : > { %v1737_v3 = vadd.f32 %v3386_v1, %v1730_v2  ;;  %v3398_v1 = vld [vmem:[%s5556_s6 + $0xb0] sm:$0xff] }
 0xf8e   : > { %v3892_v2 = vpack.c.bf16 %v3398_v1, %v3396_v62 }
 0xf8f   : > { %3653 = vmatmul.mubr.msk.f32.vlgmr.msra.gmra.mrb[16].mxu1 %vm804_vm1, %v1737_v3 }
 0xf90   : > { %2055 = vmatprep.mubr.f32.mxu1 %v4516_v30  ;;  %3889 = vmatpush1.bf16.msra.mxu1 %v3888_v57 }
 0xf91   : > { %3891 = vmatprep.subr.bf16.mxu1 %v3890_v61 }
 0xf94   : > { %3893 = vmatpush1.bf16.msra.mxu1 %v3892_v2 }
0x1062   : > { %v1822_v27 = vpop.f32.mrb[16].mxu1 }
0x1063   : > { %v1823_v28 = vadd.f32 %v3387_v26, %v1822_v27  ;;  %v3654_v29 = vpop.f32.mrb[17].mxu1  ;;  %v1981_v26 = vrot.slane %v1976_v25, %v854_v53 }
0x1065   : > { %v1827_v31 = vmul.f32 0.044715, %v1823_v28  ;;  %v1826_v36 = vmul.f32 0.5, %v1823_v28 }
0x1067   : > { %v1828_v32 = vmul.f32 %v1827_v31, %v1823_v28 }
0x1069   : > { %v1829_v33 = vmul.f32 %v1828_v32, %v1823_v28  ;;  %v1985_v32 = vrot.slane %v1976_v25, %v858_v59 }
0x106b   : > { %v1830_v34 = vadd.f32 %v1829_v33, %v1823_v28 }
0x106d   : > { %v1831_v16 = vmul.f32 0.7978846, %v1830_v34 }
0x106f   : > { %4118 = vtanh.f32 %v1831_v16 }
0x1079   : > { %v4119_v35 = vpop.eup %4118 }
0x107a   : > { %v1833_v37 = vadd.f32 1.0, %v4119_v35 }
0x107c   : > { %v1834_v38 = vmul.f32 %v1833_v37, %v1826_v36 }
0x107e   : > { %3688 = vmatmul.mubr.f32.vlgmr.msra.gmra.mrb[4].mxu0 %v1834_v38 }
0x107f   : > { %3712 = vmatprep.mubr.msk.f32.mxu0 %vm4517_vm2, %v4516_v30 }
0x1151   : > { %v1924_v40 = vpop.f32.mrb[4].mxu0 }
0x1152   : > { %v1925_v41 = vadd.f32 %v3389_v39, %v1924_v40  ;;  %v3689_v50 = vpop.f32.mrb[5].mxu0 }
0x1154   : > { %v1928_v42 = vadd.f32 %v1925_v41, %v1737_v3  ;;  %v3401_v3 = vld [vmem:[%s5556_s6 + $0xc8] sm:$0xff] }
0x1155   : > { %v3894_v5 = vpack.c.bf16 %v3403_v4, %v3401_v3 }
0x1156   : > { %v1931_v43 = vsel %vm804_vm1, %v1928_v42, 0.0 }
0x1157   : > { %1932 = vadd.xlane.f32.xlu1 %v1931_v43  ;;  %3895 = vmatprep.subr.bf16.mxu1 %v3894_v5 }
0x1158   : > { %3897 = vmatpush1.bf16.msra.mxu1 %v3896_v63 }
0x1159   : > { %3899 = vmatprep.subr.bf16.mxu1 %v3898_v12 }
0x115c   : > { %3901 = vmatpush1.bf16.msra.mxu1 %v3900_v14 }
0x115d   : > { %3690 = vmatprep.subr.mxu1 %v4516_v30 }
0x11e4   : > { %v1933_v44 = vpop.xlane.xlu1 %1932 }
0x11e5   : > { %v1934_v45 = vmul.f32 0.015625, %v1933_v44 }
0x11e7   : > { %v1935_v46 = vsub.f32 %v1928_v42, %v1934_v45 }
0x11e9   : > { %v1936_v47 = vmul.f32 %v1935_v46, %v1935_v46 }
0x11eb   : > { %v1937_v48 = vsel %vm804_vm1, %v1936_v47, 0.0 }
0x11ec   : > { %1938 = vadd.xlane.f32.xlu1 %v1937_v48 }
0x1279   : > { %v1939_v15 = vpop.xlane.xlu1 %1938 }
0x127a   : > { %v1940_v17 = vmul.f32 0.015625, %v1939_v15 }
0x127c   : > { %v1941_v18 = vadd.f32 1e-12, %v1940_v17 }
0x127e   : > { %4120 = vrsqrt.f32 %v1941_v18 }
0x1288   : > { %v4121_v19 = vpop.eup %4120 }
0x1289   : > { %v1943_v21 = vmul.f32 %v4121_v19, %v1935_v46 }
0x128b   : > { %v1950_v23 = vmul.f32 %v3390_v20, %v1943_v21 }
0x128d   : > { %v5334_v24 = vadd.f32 %v3391_v22, %v1950_v23 }
0x128f   : > { %3408 = vmatmul.mubr.msk.f32.vlgmr.msra.gmra.mrb[18].mxu1 %vm804_vm1, %v5334_v24 }
0x1290   : > { %3692 = vmatprep.mubr.msk.f32.mxu1 %vm4517_vm2, %v4516_v30 }
0x1362   : > { %v2057_v27 = vpop.f32.mrb[18].mxu1 }
0x1363   : > { %v2058_v28 = vadd.f32 %v2057_v27, %v1981_v26  ;;  %v2059_v29 = vpop.f32.mrb[19].mxu1 }
0x1364   : > { %v5352_v33 = vadd.f32 %v2059_v29, %v1985_v32 }
0x1365   : > { %2064 = vrot.lane.b32.xlu1 %v2058_v28, %s4519_s14  ;;  %v2062_v31 = vmul.f32 0.25, %v2058_v28 }
0x1369   : > { %2225 = vrot.lane.b32.xlu1 %v2062_v31, %s4520_s24 }
0x136d   : > { %2393 = vrot.lane.b32.xlu1 %v2058_v28, %s4521_s23 }
0x1371   : > { %2391 = vrot.lane.b32.xlu1 %v2062_v31, %s4522_s28 }
0x1375   : > { %2558 = vrot.lane.b32.xlu1 %v2058_v28, %s4523_s30 }
0x1379   : > { %2556 = vrot.lane.b32.xlu1 %v2062_v31, %s4524_s7 }
0x13d7   : > { %v2065_v53 = vpop.permute.xlu1 %2064 }
0x13d8   : > { %3691 = vmatpush3.xpose.msk.msra.mxu1 %vm946_vm3, %v2065_v53  ;;  %v3421_v53 = vld [vmem:[%s5558_s8 + $0x40] sm:$0xff] }
0x13d9   : > { %3695 = vmatprep.subr.mxu1 %v4516_v30 }
0x13db   : > { %v2226_v34 = vpop.permute.xlu1 %2225  ;;  %3693 = vmatmul.mubr.msk.f32.vlgmr.msra.gmra.mrb[20].mxu1 %vm946_vm3, %v2062_v31 }
0x13dc   : > { %3696 = vmatpush3.msra.mxu1 %v5352_v33  ;;  %3697 = vmatprep.mubr.msk.f32.mxu1 %vm4517_vm2, %v4516_v30 }
0x13dd   : > { %3700 = vmatprep.subr.mxu1 %v4516_v30 }
0x13df   : > { %v2394_v16 = vpop.permute.xlu1 %2393 }
0x13e0   : > { %3711 = vmatpush3.xpose.msk.msra.mxu0 %vm946_vm3, %v2394_v16 }
0x13e1   : > { %3720 = vmatprep.subr.mxu0 %v4516_v30 }
0x13e3   : > { %v2392_v52 = vpop.permute.xlu1 %2391 }
0x13e4   : > { %3713 = vmatmul.mubr.msk.f32.vlgmr.msra.gmra.mrb[6].mxu0 %vm946_vm3, %v2392_v52  ;;  %v3424_v52 = vld [vmem:[%s5558_s8 + $0x58] sm:$0xff] }
0x13e5   : > { %3722 = vmatprep.mubr.msk.f32.mxu0 %vm4517_vm2, %v4516_v30 }
0x13e7   : > { %v2559_v59 = vpop.permute.xlu1 %2558 }
0x13e8   : > { %3721 = vmatpush3.xpose.msk.msra.mxu0 %vm946_vm3, %v2559_v59 }
0x13e9   : > { %3902 = vmatprep.subr.bf16.mxu0 %v4525_v9 }
0x13eb   : > { %v2557_v35 = vpop.permute.xlu1 %2556 }
0x13ec   : > { %3723 = vmatmul.mubr.msk.f32.vlgmr.msra.gmra.mrb[8].mxu0 %vm946_vm3, %v2557_v35  ;;  %v3425_v35 = vld [vmem:[%s5558_s8 + $0x60] sm:$0xff] }
0x13ed   : > { %3746 = vmatprep.mubr.msk.f32.mxu0 %vm4517_vm2, %v4516_v30 }
0x14ae   : > { %v2137_v36 = vpop.f32.mrb[20].mxu1 }
0x14af   : > { %v2138_v37 = vadd.f32 %v5092_v0, %v2137_v36  ;;  %v3694_v38 = vpop.f32.mrb[21].mxu1  ;;  %v3426_v36 = vld [vmem:[%s5558_s8 + $0x68] sm:$0xff] }
0x14b0   : > { %v3427_v38 = vld [vmem:[%s5558_s8 + $0x70] sm:$0xff] }
0x14b1   : > { %v2141_v39 = vsel %vm1022_vm4, %v2138_v37, -inf }
0x14b2   : > { %2142 = vmax.xlane.f32.xlu0 %v2141_v39  ;;  %v3428_v39 = vld [vmem:[%s5558_s8 + $0x78] sm:$0xff] }
0x14b7   : > { %v2465_v40 = vpop.f32.mrb[6].mxu0 }
0x14b8   : > { %v3714_v41 = vpop.f32.mrb[7].mxu0  ;;  %v2466_v48 = vadd.f32 %v5092_v0, %v2465_v40  ;;  %v3912_v40 = vpack.c.bf16 %v3428_v39, %v3427_v38  ;;  %v3454_v38 = vld [vmem:[%s5623_s21 + $0xd8] sm:$0xff] }
0x14ba   : > { %v2469_v51 = vsel %vm1022_vm4, %v2466_v48, -inf }
0x14bf   : > { %v2630_v50 = vpop.f32.mrb[8].mxu0 }
0x14c0   : > { %v3724_v42 = vpop.f32.mrb[9].mxu0  ;;  %v2631_v49 = vadd.f32 %v5092_v0, %v2630_v50 }
0x14c2   : > { %v2634_v54 = vsel %vm1022_vm4, %v2631_v49, -inf }
0x153f   : > { %v2143_v43 = vpop.xlane.xlu0 %2142 }
0x1540   : > { %v2144_v44 = vsub.f32 %v2138_v37, %v2143_v43  ;;  %v3909_v37 = vpack.c.bf16 %v3426_v36, %v3425_v35  ;;  %v3452_v35 = vld [vmem:[%s5623_s21 + $0xc8] sm:$0xff] }
0x1542   : > { %v2145_v45 = vmul.f32 1.442695, %v2144_v44 }
0x1544   : > { %4122 = vpow2.f32 %v2145_v45 }
0x154e   : > { %v4123_v46 = vpop.eup %4122 }
0x154f   : > { %v2147_v47 = vsel %vm1022_vm4, %v4123_v46, 0.0 }
0x1550   : > { %2148 = vadd.xlane.f32.xlu0 %v2147_v47 }
0x1566   : > { %2227 = vrot.lane.b32.xlu0 %v2058_v28, %s4518_s2 }
0x1585   : > { %2470 = vmax.xlane.f32.xlu0 %v2469_v51 }
0x1589   : > { %2635 = vmax.xlane.f32.xlu0 %v2634_v54 }
0x15dd   : > { %v2149_v55 = vpop.xlane.xlu0 %2148 }
0x15de   : > { %4124 = vrcp.f32 %v2149_v55  ;;  %v3429_v55 = vld [vmem:[#allocation9 + $0x1] ss:$0 sm:$0xff] }
0x15e1   : > { %v2228_v58 = vpop.permute.xlu0 %2227 }
0x15e8   : > { %v4125_v56 = vpop.eup %4124 }
0x15e9   : > { %v2151_v57 = vmul.f32 %v4125_v56, %v4123_v46 }
0x15eb   : > { %3698 = vmatmul.mubr.msk.f32.vlgmr.msra.gmra.mrb[22].mxu1 %vm1022_vm4, %v2151_v57 }
0x15ec   : > { %3701 = vmatpush3.xpose.msk.msra.mxu1 %vm946_vm3, %v2228_v58  ;;  %3702 = vmatprep.mubr.msk.f32.mxu1 %vm4517_vm2, %v4516_v30 }
0x15ed   : > { %3705 = vmatprep.subr.mxu1 %v4516_v30 }
0x15ef   : > { %3703 = vmatmul.mubr.msk.f32.vlgmr.msra.gmra.mrb[24].mxu1 %vm946_vm3, %v2226_v34  ;;  %v3423_v34 = vld [vmem:[%s5558_s8 + $0x50] sm:$0xff] }
0x15f0   : > { %3707 = vmatprep.mubr.msk.f32.mxu1 %vm4517_vm2, %v4516_v30  ;;  %v3906_v59 = vpack.c.bf16 %v3424_v52, %v3423_v34  ;;  %v3449_v34 = vld [vmem:[%s5623_s21 + $0xb0] sm:$0xff] }
0x1612   : > { %v2471_v60 = vpop.xlane.xlu0 %2470 }
0x1613   : > { %v2472_v61 = vsub.f32 %v2466_v48, %v2471_v60 }
0x1615   : > { %v2473_v62 = vmul.f32 1.442695, %v2472_v61 }
0x1616   : > { %v2636_v3 = vpop.xlane.xlu0 %2635 }
0x1617   : > { %4126 = vpow2.f32 %v2473_v62  ;;  %v2637_v5 = vsub.f32 %v2631_v49, %v2636_v3 }
0x1619   : > { %v2638_v7 = vmul.f32 1.442695, %v2637_v5  ;;  %v3433_v5 = vld [vmem:[%s5622_s12 + $0x40] sm:$0xff] }
0x161b   : > { %4128 = vpow2.f32 %v2638_v7 }
0x1621   : > { %v4127_v1 = vpop.eup %4126 }
0x1622   : > { %v2475_v2 = vsel %vm1022_vm4, %v4127_v1, 0.0 }
0x1623   : > { %2476 = vadd.xlane.f32.xlu0 %v2475_v2 }
0x1625   : > { %v4129_v14 = vpop.eup %4128 }
0x1626   : > { %v2640_v15 = vsel %vm1022_vm4, %v4129_v14, 0.0 }
0x1639   : > { %2315 = vrot.lane.b32.xlu0 %v5352_v33, %s4520_s24 }
0x16b0   : > { %v2477_v4 = vpop.xlane.xlu0 %2476 }
0x16b4   : > { %v2316_v6 = vpop.permute.xlu0 %2315 }
0x16b5   : > { %3706 = vmatpush3.msra.mxu1 %v2316_v6  ;;  %v3434_v6 = vld [vmem:[%s5622_s12 + $0x48] sm:$0xff] }
0x16b6   : > { %3715 = vmatprep.subr.mxu1 %v4516_v30  ;;  %v3915_v7 = vpack.c.bf16 %v3434_v6, %v3433_v5 }
0x16be   : > { %v5389_v63 = vpop.f32.mrb[22].mxu1 }
0x16bf   : > { %v3699_v8 = vpop.f32.mrb[23].mxu1 }
0x16c2   : > { %v2299_v10 = vpop.f32.mrb[24].mxu1 }
0x16c3   : > { %v2300_v11 = vadd.f32 %v5092_v0, %v2299_v10  ;;  %v3704_v12 = vpop.f32.mrb[25].mxu1  ;;  %v3437_v10 = vld [vmem:[%s5622_s12 + $0x60] sm:$0xff] }
0x16c5   : > { %v2303_v13 = vsel %vm1022_vm4, %v2300_v11, -inf }
0x16c6   : > { %2304 = vmax.xlane.f32.xlu1 %v2303_v13  ;;  %v3439_v13 = vld [vmem:[%s5622_s12 + $0x70] sm:$0xff] }
0x16ca   : > { %2641 = vadd.xlane.f32.xlu1 %v2640_v15 }
0x16db   : > { %2480 = vrot.lane.b32.xlu1 %v5352_v33, %s4522_s28 }
0x1753   : > { %v2305_v17 = vpop.xlane.xlu1 %2304 }
0x1754   : > { %v2306_v18 = vsub.f32 %v2300_v11, %v2305_v17  ;;  %v3438_v11 = vld [vmem:[%s5622_s12 + $0x68] sm:$0xff]  ;;  %v3443_v17 = vld [vmem:[%s5623_s21 + $0x80] sm:$0xff] }
0x1755   : > { %v3921_v12 = vpack.c.bf16 %v3438_v11, %v3437_v10  ;;  %v3084_v10 = vld [vmem:[#allocation19] sm:$0xff]  ;;  %v3085_v11 = vld [vmem:[#allocation19 + $0x8] sm:$0xff] }
0x1756   : > { %v2307_v19 = vmul.f32 1.442695, %v2306_v18  ;;  %v3444_v18 = vld [vmem:[%s5623_s21 + $0x88] sm:$0xff] }
0x1757   : > { %v2642_v0 = vpop.xlane.xlu1 %2641 }
0x1758   : > { %4130 = vpow2.f32 %v2307_v19  ;;  %v3927_v19 = vpack.c.bf16 %v3444_v18, %v3443_v17  ;;  %v3088_v17 = vld [vmem:[#allocation19 + $0x20] sm:$0xff]  ;;  %v3089_v18 = vld [vmem:[#allocation19 + $0x28] sm:$0xff] }
0x175b   : > { %v2481_v22 = vpop.permute.xlu1 %2480 }
0x1762   : > { %v4131_v20 = vpop.eup %4130 }
0x1763   : > { %v2309_v21 = vsel %vm1022_vm4, %v4131_v20, 0.0 }
0x1764   : > { %2310 = vadd.xlane.f32.xlu1 %v2309_v21 }
0x1775   : > { %2645 = vrot.lane.b32.xlu1 %v5352_v33, %s4524_s7  ;;  %v3422_v33 = vld [vmem:[%s5558_s8 + $0x48] sm:$0xff] }
0x1776   : > { %v3903_v16 = vpack.c.bf16 %v3422_v33, %v3421_v53  ;;  %v3447_v53 = vld [vmem:[%s5623_s21 + $0xa0] sm:$0xff] }
0x1778   : > { %3904 = vmatpush3.bf16.msra.mxu0 %v3903_v16  ;;  %v3450_v16 = vld [vmem:[%s5623_s21 + $0xb8] sm:$0xff] }
0x1779   : > { %3905 = vmatprep.subr.bf16.mxu0 %v4525_v9  ;;  %v3936_v52 = vpack.c.bf16 %v3450_v16, %v3449_v34 }
0x177c   : > { %3907 = vmatpush3.bf16.msra.mxu0 %v3906_v59  ;;  %v3451_v59 = vld [vmem:[%s5623_s21 + $0xc0] sm:$0xff] }
0x177d   : > { %3908 = vmatprep.subr.bf16.mxu0 %v4525_v9  ;;  %v3939_v36 = vpack.c.bf16 %v3452_v35, %v3451_v59 }
0x1780   : > { %3910 = vmatpush3.bf16.msra.mxu0 %v3909_v37  ;;  %v3453_v37 = vld [vmem:[%s5623_s21 + $0xd0] sm:$0xff] }
0x1781   : > { %3911 = vmatprep.subr.bf16.mxu0 %v4525_v9  ;;  %v3942_v39 = vpack.c.bf16 %v3454_v38, %v3453_v37 }
0x1784   : > { %3913 = vmatpush3.bf16.msra.mxu0 %v3912_v40  ;;  %v3455_v40 = vld [vmem:[%s5623_s21 + $0xe0] sm:$0xff] }
0x1785   : > { %3926 = vmatprep.subr.bf16.mxu0 %v4525_v9 }
0x17f1   : > { %v2311_v23 = vpop.xlane.xlu1 %2310 }
0x17f2   : > { %4132 = vrcp.f32 %v2311_v23  ;;  %v3431_v23 = vld [vmem:[#allocation10 + $0x1] ss:$0 sm:$0xff] }
0x17f3   : > { %4134 = vrcp.f32 %v2477_v4 }
0x17f4   : > { %4136 = vrcp.f32 %v2642_v0 }
0x17f5   : > { %v2646_v31 = vpop.permute.xlu1 %2645 }
0x17fc   : > { %v4133_v25 = vpop.eup %4132 }
0x17fd   : > { %v2313_v26 = vmul.f32 %v4133_v25, %v4131_v20  ;;  %v4135_v27 = vpop.eup %4134 }
0x17fe   : > { %v2479_v28 = vmul.f32 %v4135_v27, %v4127_v1  ;;  %v4137_v29 = vpop.eup %4136 }
0x17ff   : > { %3708 = vmatmul.mubr.msk.f32.vlgmr.msra.gmra.mrb[26].mxu1 %vm1022_vm4, %v2313_v26  ;;  %v2644_v32 = vmul.f32 %v4137_v29, %v4129_v14  ;;  %v3440_v14 = vld [vmem:[%s5622_s12 + $0x78] sm:$0xff]  ;;  %v3432_v26 = vld [vmem:[#allocation12 + $0x1] ss:$0 sm:$0xff] }
0x1800   : > { %3716 = vmatpush3.msra.mxu1 %v2481_v22  ;;  %3717 = vmatprep.mubr.msk.f32.mxu1 %vm4517_vm2, %v4516_v30  ;;  %v3924_v15 = vpack.c.bf16 %v3440_v14, %v3439_v13  ;;  %v3445_v29 = vld [vmem:[%s5623_s21 + $0x90] sm:$0xff] }
0x1801   : > { %3725 = vmatprep.subr.mxu1 %v4516_v30  ;;  %v3086_v13 = vld [vmem:[#allocation19 + $0x10] sm:$0xff]  ;;  %v3087_v14 = vld [vmem:[#allocation19 + $0x18] sm:$0xff] }
0x1803   : > { %3718 = vmatmul.mubr.msk.f32.vlgmr.msra.gmra.mrb[28].mxu1 %vm1022_vm4, %v2479_v28 }
0x1804   : > { %3726 = vmatpush3.msra.mxu1 %v2646_v31  ;;  %3727 = vmatprep.mubr.msk.f32.mxu1 %vm4517_vm2, %v4516_v30  ;;  %v3446_v31 = vld [vmem:[%s5623_s21 + $0x98] sm:$0xff] }
0x1805   : > { %3914 = vmatprep.subr.bf16.mxu1 %v4525_v9 }
0x1807   : > { %3728 = vmatmul.mubr.msk.f32.vlgmr.msra.gmra.mrb[30].mxu1 %vm1022_vm4, %v2644_v32  ;;  %v3930_v32 = vpack.c.bf16 %v3446_v31, %v3445_v29  ;;  %v3461_v29 = vld [vmem:[#allocation18 + $0x1] ss:$0 sm:$0xff] }
0x1808   : > { %3765 = vmatprep.mubr.msk.f32.mxu1 %vm4517_vm2, %v4516_v30  ;;  %3916 = vmatpush3.bf16.msra.mxu1 %v3915_v7 }
0x1809   : > { %3917 = vmatprep.subr.bf16.mxu1 %v4525_v9 }
0x18d2   : > { %v2387_v41 = vpop.f32.mrb[26].mxu1 }
0x18d3   : > { %2722 = vrot.lane.b32.xlu0 %v2387_v41, %s4523_s30  ;;  %v3709_v50 = vpop.f32.mrb[27].mxu1  ;;  %v3456_v41 = vld [vmem:[%s5623_s21 + $0xe8] sm:$0xff] }
0x18d4   : > { %v3945_v50 = vpack.c.bf16 %v3456_v41, %v3455_v40 }
0x18d6   : > { %v2552_v42 = vpop.f32.mrb[28].mxu1 }
0x18d7   : > { %2726 = vrot.lane.b32.xlu1 %v2552_v42, %s4521_s23  ;;  %v3719_v43 = vpop.f32.mrb[29].mxu1  ;;  %v3457_v42 = vld [vmem:[%s5623_s21 + $0xf0] sm:$0xff] }
0x18d8   : > { %v3458_v43 = vld [vmem:[%s5623_s21 + $0xf8] sm:$0xff] }
0x18da   : > { %v2717_v44 = vpop.f32.mrb[30].mxu1 }
0x18db   : > { %2730 = vrot.lane.b32.xlu0 %v2717_v44, %s4518_s2  ;;  %v3729_v45 = vpop.f32.mrb[31].mxu1  ;;  %v3948_v44 = vpack.c.bf16 %v3458_v43, %v3457_v42 }
0x18dc   : > { %v3441_v45 = vld [vmem:[#allocation13 + $0x1] ss:$0 sm:$0xff] }
0x1945   : > { %v2723_v46 = vpop.permute.xlu0 %2722 }
0x1946   : > { %v2733_v48 = vsel %vm946_vm3, %v5389_v63, %v2723_v46  ;;  %v3436_v63 = vld [vmem:[%s5622_s12 + $0x58] sm:$0xff] }
0x1949   : > { %v2727_v47 = vpop.permute.xlu1 %2726 }
0x194a   : > { %v2734_v49 = vsel %vm1616_vm5, %v2733_v48, %v2727_v47 }
0x194d   : > { %v2731_v51 = vpop.permute.xlu0 %2730 }
0x194e   : > { %v2735_v54 = vsel %vm1618_vm6, %v2734_v49, %v2731_v51 }
0x194f   : > { %3747 = vmatmul.mubr.msk.f32.vlgmr.msra.gmra.mrb[10].mxu0 %vm804_vm1, %v2735_v54 }
0x1950   : > { %3800 = vmatprep.mubr.msk.f32.mxu0 %vm4517_vm2, %v4516_v30  ;;  %3928 = vmatpush3.bf16.msra.mxu0 %v3927_v19  ;;  %v3957_v19 = vpack.c.bf16 %v3089_v18, %v3088_v17 }
0x1951   : > { %3929 = vmatprep.subr.bf16.mxu0 %v4525_v9 }
0x1954   : > { %3931 = vmatpush3.bf16.msra.mxu0 %v3930_v32 }
0x1955   : > { %3932 = vmatprep.subr.bf16.mxu0 %v4525_v9 }
0x1a22   : > { %v2822_v56 = vpop.f32.mrb[10].mxu0 }
0x1a23   : > { %v2823_v57 = vadd.f32 %v3429_v55, %v2822_v56  ;;  %v3748_v58 = vpop.f32.mrb[11].mxu0 }
0x1a25   : > { %v2826_v60 = vadd.f32 %v2823_v57, %v5334_v24  ;;  %v3435_v24 = vld [vmem:[%s5622_s12 + $0x50] sm:$0xff] }
0x1a26   : > { %v3918_v8 = vpack.c.bf16 %v3436_v63, %v3435_v24 }
0x1a27   : > { %v2831_v61 = vsel %vm804_vm1, %v2826_v60, 0.0 }
0x1a28   : > { %2832 = vadd.xlane.f32.xlu1 %v2831_v61  ;;  %3919 = vmatpush3.bf16.msra.mxu1 %v3918_v8 }
0x1a29   : > { %3920 = vmatprep.subr.bf16.mxu1 %v4525_v9 }
0x1a2c   : > { %3922 = vmatpush3.bf16.msra.mxu1 %v3921_v12  ;;  %v3951_v12 = vpack.c.bf16 %v3085_v11, %v3084_v10 }
0x1a2d   : > { %3923 = vmatprep.subr.bf16.mxu1 %v4525_v9 }
0x1a30   : > { %3925 = vmatpush3.bf16.msra.mxu1 %v3924_v15  ;;  %v3954_v15 = vpack.c.bf16 %v3087_v14, %v3086_v13 }
0x1a31   : > { %3950 = vmatprep.subr.bf16.mxu1 %v4525_v9 }
0x1ab5   : > { %v2833_v62 = vpop.xlane.xlu1 %2832 }
0x1ab6   : > { %v2834_v1 = vmul.f32 0.015625, %v2833_v62  ;;  %v3459_v62 = vld [vmem:[#allocation15 + $0x1] ss:$0 sm:$0xff] }
0x1ab8   : > { %v2835_v2 = vsub.f32 %v2826_v60, %v2834_v1 }
0x1aba   : > { %v2836_v3 = vmul.f32 %v2835_v2, %v2835_v2 }
0x1abc   : > { %v2837_v4 = vsel %vm804_vm1, %v2836_v3, 0.0 }
0x1abd   : > { %2838 = vadd.xlane.f32.xlu0 %v2837_v4 }
0x1b4a   : > { %v2839_v20 = vpop.xlane.xlu0 %2838 }
0x1b4b   : > { %v2840_v21 = vmul.f32 0.015625, %v2839_v20  ;;  %v3090_v20 = vld [vmem:[#allocation19 + $0x30] sm:$0xff] }
0x1b4d   : > { %v2841_v0 = vadd.f32 1e-12, %v2840_v21  ;;  %v3091_v21 = vld [vmem:[#allocation19 + $0x38] sm:$0xff] }
0x1b4f   : > { %4138 = vrsqrt.f32 %v2841_v0  ;;  %v3960_v0 = vpack.c.bf16 %v3091_v21, %v3090_v20 }
0x1b59   : > { %v4139_v22 = vpop.eup %4138 }
0x1b5a   : > { %v2843_v25 = vmul.f32 %v4139_v22, %v2835_v2 }
0x1b5c   : > { %v2850_v27 = vmul.f32 %v3431_v23, %v2843_v25 }
0x1b5e   : > { %v2857_v28 = vadd.f32 %v3432_v26, %v2850_v27  ;;  %v3460_v27 = vld [vmem:[#allocation16 + $0x1] ss:$0 sm:$0xff] }
0x1b60   : > { %3766 = vmatmul.mubr.msk.f32.vlgmr.msra.gmra.mrb[32].mxu1 %vm804_vm1, %v2857_v28 }
0x1b61   : > { %3819 = vmatprep.mubr.msk.f32.mxu1 %vm4517_vm2, %v4516_v30  ;;  %v3448_v30 = vld [vmem:[%s5623_s21 + $0xa8] sm:$0xff]  ;;  %3952 = vmatpush3.bf16.msra.mxu1 %v3951_v12 }
0x1b62   : > { %v3933_v33 = vpack.c.bf16 %v3448_v30, %v3447_v53  ;;  %3953 = vmatprep.subr.bf16.mxu1 %v4525_v9  ;;  %v3462_v53 = vld [vmem:[#allocation21] ss:$0 sm:$0xff] }
0x1b64   : > { %3934 = vmatpush3.bf16.msra.mxu0 %v3933_v33 }
0x1b65   : > { %3935 = vmatprep.subr.bf16.mxu0 %v4525_v9  ;;  %3955 = vmatpush3.bf16.msra.mxu1 %v3954_v15 }
0x1b66   : > { %3956 = vmatprep.subr.bf16.mxu1 %v4525_v9 }
0x1b68   : > { %3937 = vmatpush3.bf16.msra.mxu0 %v3936_v52 }
0x1b69   : > { %3938 = vmatprep.subr.bf16.mxu0 %v4525_v9  ;;  %3958 = vmatpush3.bf16.msra.mxu1 %v3957_v19 }
0x1b6a   : > { %3959 = vmatprep.subr.bf16.mxu1 %v4525_v9 }
0x1b6c   : > { %3940 = vmatpush3.bf16.msra.mxu0 %v3939_v36 }
0x1b6d   : > { %3941 = vmatprep.subr.bf16.mxu0 %v4525_v9  ;;  %3961 = vmatpush3.bf16.msra.mxu1 %v3960_v0 }
0x1b70   : > { %3943 = vmatpush3.bf16.msra.mxu0 %v3942_v39 }
0x1b71   : > { %3944 = vmatprep.subr.bf16.mxu0 %v4525_v9 }
0x1b74   : > { %3946 = vmatpush3.bf16.msra.mxu0 %v3945_v50 }
0x1b75   : > { %3947 = vmatprep.subr.bf16.mxu0 %v4525_v9 }
0x1b78   : > { %3949 = vmatpush3.bf16.msra.mxu0 %v3948_v44 }
0x1c33   : > { %v2944_v46 = vpop.f32.mrb[32].mxu1 }
0x1c34   : > { %v2945_v47 = vadd.f32 %v3441_v45, %v2944_v46  ;;  %v3767_v48 = vpop.f32.mrb[33].mxu1 }
0x1c36   : > { %v2949_v49 = vmul.f32 0.044715, %v2945_v47  ;;  %v2948_v58 = vmul.f32 0.5, %v2945_v47 }
0x1c38   : > { %v2950_v51 = vmul.f32 %v2949_v49, %v2945_v47 }
0x1c3a   : > { %v2951_v54 = vmul.f32 %v2950_v51, %v2945_v47 }
0x1c3c   : > { %v2952_v55 = vadd.f32 %v2951_v54, %v2945_v47 }
0x1c3e   : > { %v2953_v56 = vmul.f32 0.7978846, %v2952_v55 }
0x1c40   : > { %4140 = vtanh.f32 %v2953_v56 }
0x1c4a   : > { %v4141_v57 = vpop.eup %4140 }
0x1c4b   : > { %v2955_v60 = vadd.f32 1.0, %v4141_v57 }
0x1c4d   : > { %v2956_v61 = vmul.f32 %v2955_v60, %v2948_v58 }
0x1c4f   : > { %3801 = vmatmul.mubr.f32.vlgmr.msra.gmra.mrb[12].mxu0 %v2956_v61 }
0x1d22   : > { %v3048_v1 = vpop.f32.mrb[12].mxu0 }
0x1d23   : > { %v3049_v2 = vadd.f32 %v3459_v62, %v3048_v1  ;;  %v3802_v3 = vpop.f32.mrb[13].mxu0 }
0x1d25   : > { %v3052_v4 = vadd.f32 %v3049_v2, %v2857_v28 }
0x1d27   : > { %v3057_v5 = vsel %vm804_vm1, %v3052_v4, 0.0 }
0x1d28   : > { %3058 = vadd.xlane.f32.xlu0 %v3057_v5 }
0x1db5   : > { %v3059_v6 = vpop.xlane.xlu0 %3058 }
0x1db6   : > { %v3060_v7 = vmul.f32 0.015625, %v3059_v6 }
0x1db8   : > { %v3061_v24 = vsub.f32 %v3052_v4, %v3060_v7 }
0x1dba   : > { %v3062_v63 = vmul.f32 %v3061_v24, %v3061_v24 }
0x1dbc   : > { %v3063_v8 = vsel %vm804_vm1, %v3062_v63, 0.0 }
0x1dbd   : > { %3064 = vadd.xlane.f32.xlu1 %v3063_v8 }
0x1e4a   : > { %v3065_v22 = vpop.xlane.xlu1 %3064 }
0x1e4b   : > { %v3066_v23 = vmul.f32 0.015625, %v3065_v22 }
0x1e4d   : > { %v3067_v25 = vadd.f32 1e-12, %v3066_v23 }
0x1e4f   : > { %4142 = vrsqrt.f32 %v3067_v25 }
0x1e59   : > { %v4143_v26 = vpop.eup %4142 }
0x1e5a   : > { %v3069_v28 = vmul.f32 %v4143_v26, %v3061_v24 }
0x1e5c   : > { %v3076_v31 = vmul.f32 %v3460_v27, %v3069_v28 }
0x1e5e   : > { %v3083_v32 = vadd.f32 %v3461_v29, %v3076_v31 }
0x1e60   : > { %3820 = vmatmul.mubr.msk.f32.vlgmr.msra.gmra.mrb[34].mxu1 %vm804_vm1, %v3083_v32 }
0x1f33   : > { %v3168_v9 = vpop.f32.mrb[34].mxu1 }
0x1f34   : > { %v3169_v30 = vadd.f32 %v3462_v53, %v3168_v9  ;;  %v3821_v33 = vpop.f32.mrb[35].mxu1 }
0x1f36   : > { %3172 = vst [vmem:[%s757_s25] sm:$0xff] %v3169_v30 }
0x1f37 PF: > { %s5625_s14 = sld [smem:[#allocation29_spill]] }
0x1f3d   : > { %s42_s25 = sadd.s32 1, %s5625_s14  }
0x1f3e   : > { %p39_p4 = scmp.ge.s32.totalorder %s42_s25, 4  }
0x1f40   :  { %41 = sbr.rel (!%p39_p4) target bundleno = 32 (0x20), region = 191 }
0x1f47   :  { %3192 = vsyncpa [#allocation6], 1 }
0x1f48   :  { %3194 = vsyncpa [#allocation6 + $0x1], 1 }
0x1f49   :  { %3195 = vsyncpa [#allocation8], 1 }
0x1f4a   :  { %3196 = vsyncpa [#allocation11], 1 }
0x1f4b   :  { %3197 = vsyncpa [#allocation14], 1 }
0x1f4c   :  { %3198 = vsyncpa [#allocation17], 1 }
0x1f4d   :  { %3199 = vsyncpa [#allocation20], 1 }

</bundles_post_ra>
